<compile_context>
chip_gen: v5e
topology: v5e:2x2
jax: 0.10.0
libtpu: 0.0.40
codegen_flags: <defaults>
</compile_context>

<pallas_src>
import jax
import jax.numpy as jnp
from jax import lax
from jax.experimental import pallas as pl
from jax.experimental.pallas import tpu as pltpu


def _round_up(x, m):
    return (x + m - 1) // m * m


# ------------------------------- forward -------------------------------------
def general_encoder_forward(states, actions, rewards, next_states, params):
    """Pallas implementation of GeneralEncoder.forward -> contexts (B, context_dim)."""
    del next_states  # hn_s is dead in the PyTorch forward's returned contexts

    # Mirror the (no-op for 3-D inputs) reshape of the PyTorch forward.
    states = states.reshape((-1, *states.shape[-2:]))
    actions = actions.reshape((-1, *actions.shape[-2:]))
    rewards = rewards.reshape((-1, *rewards.shape[-2:]))

    L, B, state_dim = states.shape
    action_dim = actions.shape[-1]
    C = params["ws"].shape[1]          # context_dim
    H = params["whh_t"].shape[0]       # context_hidden_dim

    d_in = action_dim + state_dim + 1  # fused encoder input width
    C3 = 3 * C                         # GRU input width
    G3 = 3 * H                         # packed r|z|n gate width

    f32 = jnp.float32
    mmdt = jnp.bfloat16                # MXU operand dtype; accumulation stays f32

    # Lane-dense padded sizes (128-lane vreg).
    Din_p = _round_up(d_in, 128)
    C3_p = _round_up(C3, 128)
    G_p = _round_up(G3, 128)           # gates packed at 3H, only total rounded

    # Batch tile: multiple of 16 (bf16 sublanes), capped at 128 (v5e MXU tile),
    # split into >=2 tiles when B allows so v7x's 2 TCs both get "parallel" work.
    bt = _round_up(min(B, 128), 16)
    if B >= 32:
        bt = min(bt, _round_up((B + 1) // 2, 16))
    B_p = _round_up(B, bt)
    n_bt = B_p // bt

    # Time chunk: Tt steps per grid step (amortizes per-step grid overhead and
    # makes the hoisted matmuls MXU-efficient).
    Tt = min(L, 16)
    n_tc = (L + Tt - 1) // Tt
    L_p = n_tc * Tt
    static_chunks = (L % Tt == 0)

    # ---- fused encoder input [actions | states | rewards], chunk-major 2-D slab.
    xin = jnp.concatenate([actions, states, rewards], axis=-1).astype(f32)
    xin = jnp.pad(xin, ((0, L_p - L), (0, B_p - B), (0, Din_p - d_in)))
    xin = xin.reshape(n_tc, Tt, n_bt, bt, Din_p).transpose(2, 0, 1, 3, 4)
    xin = xin.reshape(n_bt * n_tc * Tt * bt, Din_p).astype(mmdt)

    # ---- block-diagonal encoder weight: ONE matmul produces [ha | hs | hr].
    wenc = jnp.zeros((Din_p, C3_p), f32)
    wenc = wenc.at[0:action_dim, 0:C].set(params["wa"])
    wenc = wenc.at[action_dim:action_dim + state_dim, C:2 * C].set(params["ws"])
    wenc = wenc.at[action_dim + state_dim:d_in, 2 * C:3 * C].set(params["wr"])
    wenc = wenc.astype(mmdt)
    benc = jnp.zeros((1, C3_p), f32)
    benc = benc.at[0, 0:C].set(params["ba"])
    benc = benc.at[0, C:2 * C].set(params["bs"])
    benc = benc.at[0, 2 * C:3 * C].set(params["br"])

    # ---- GRU weights (in, out) with gates packed contiguously r|z|n at [0:3H].
    wih = jnp.zeros((C3_p, G_p), f32).at[0:C3, 0:G3].set(params["wih_t"]).astype(mmdt)
    bih = jnp.zeros((1, G_p), f32).at[0, 0:G3].set(params["bih"])
    whh = jnp.zeros((H, G_p), f32).at[:, 0:G3].set(params["whh_t"]).astype(mmdt)
    bhh = jnp.zeros((1, G_p), f32).at[0, 0:G3].set(params["bhh"])

    def kernel(xin_ref, wenc_ref, benc_ref, wih_ref, bih_ref, whh_ref, bhh_ref,
               out_ref, gi_ref, h_ref):
        # NOTE: the time-chunk axis MUST remain the innermost ("arbitrary") grid
        # axis: h_ref carries the GRU state across chunks of one batch tile and
        # is reset at chunk 0 of every batch tile.
        c = pl.program_id(1)

        @pl.when(c == 0)
        def _init():
            h_ref[...] = jnp.zeros_like(h_ref)

        # Hoisted off the recurrence: encoder + input->gate matmuls for the
        # whole Tt-step chunk as big (Tt*bt)-row matmuls.
        xenc = jnp.maximum(
            jnp.dot(xin_ref[...], wenc_ref[...], preferred_element_type=f32)
            + benc_ref[...], 0.0)
        gi_ref[...] = (
            jnp.dot(xenc.astype(mmdt), wih_ref[...], preferred_element_type=f32)
            + bih_ref[...])

        whh_v = whh_ref[...]
        bhh_v = bhh_ref[...]

        def step(i, h):
            row = i * bt
            if not isinstance(row, int):
                row = pl.multiple_of(row, bt)
            gi_t = gi_ref[pl.ds(row, bt), :]
            # Only serial MXU push on the recurrence critical path.
            gh = jnp.dot(h.astype(mmdt), whh_v, preferred_element_type=f32) + bhh_v
            # One sigmoid over the packed r|z slab; reciprocal on the EUP slot.
            rz = pl.reciprocal(
                1.0 + jnp.exp(-(gi_t[:, 0:2 * H] + gh[:, 0:2 * H])), approx=True)
            r = rz[:, 0:H]
            z = rz[:, H:2 * H]
            n = jnp.tanh(gi_t[:, 2 * H:3 * H] + r * gh[:, 2 * H:3 * H])
            return n + z * (h - n)          # == (1 - z) * n + z * h

        h = h_ref[...]
        if static_chunks:
            for i in range(Tt):             # fully unrolled, static trip count
                h = step(i, h)
        else:
            n_valid = jnp.minimum(Tt, L - c * Tt)   # ragged last chunk
            h = lax.fori_loop(0, n_valid, step, h)
        h_ref[...] = h

        @pl.when(c == pl.num_programs(1) - 1)
        def _emit():
            out_ref[...] = h

    def resident(shape):
        # Constant index_map -> DMA'd once, VMEM-resident for the whole grid.
        # TODO(synk): pipeline_mode=pl.Buffered(1) would single-buffer these.
        return pl.BlockSpec(shape, lambda b, c: (0,) * len(shape))

    # VMEM footprint estimate; raise the scoped limit only when actually needed
    # (keeps v5e's 16 MiB / v7x's 64 MiB constraints explicit for large H/C).
    est = (2 * Tt * bt * Din_p * 2
           + 2 * (Din_p * C3_p + C3_p * G_p + H * G_p) * 2
           + 2 * (C3_p + 2 * G_p) * 4
           + Tt * bt * G_p * 4 + bt * H * 4
           + 2 * bt * H * 4)
    vmem_limit = None if 2 * est < 16 * 2 ** 20 else int(min(64 * 2 ** 20, 2 * est))

    hT = pl.pallas_call(
        kernel,
        out_shape=jax.ShapeDtypeStruct((B_p, H), f32),
        grid=(n_bt, n_tc),
        in_specs=[
            pl.BlockSpec((Tt * bt, Din_p), lambda b, c: (b * n_tc + c, 0)),
            resident((Din_p, C3_p)), resident((1, C3_p)),
            resident((C3_p, G_p)), resident((1, G_p)),
            resident((H, G_p)), resident((1, G_p)),
        ],
        out_specs=pl.BlockSpec((bt, H), lambda b, c: (b, 0)),
        scratch_shapes=[pltpu.VMEM((Tt * bt, G_p), f32),   # per-chunk gi cache
                        pltpu.VMEM((bt, H), f32)],          # carried hidden state
        compiler_params=pltpu.CompilerParams(
            dimension_semantics=("parallel", "arbitrary"),
            vmem_limit_bytes=vmem_limit),
    )(xin, wenc, benc, wih, bih, whh, bhh)

    # Final projection used exactly once -> plain XLA outside the kernel
    # (frees wout/bout VMEM residency during the recurrence; matters on v7x).
    return hT[:B] @ params["wout"] + params["bout"]


# --------------------------- parameter init ----------------------------------
def init_params(key, state_dim, action_dim, context_dim, context_hidden_dim):
    C, H = context_dim, context_hidden_dim
    ks = jax.random.split(key, 8)

    def xavier(k, fan_in, fan_out):  # stored as (in, out) = PyTorch weight.T
        a = jnp.sqrt(6.0 / (fan_in + fan_out))
        return jax.random.uniform(k, (fan_in, fan_out), jnp.float32, -a, a)

    ortho = jax.nn.initializers.orthogonal()
    wih_t = jnp.transpose(ortho(ks[4], (3 * H, 3 * C), jnp.float32))  # (3C, 3H)
    whh_t = jnp.transpose(ortho(ks[5], (3 * H, H), jnp.float32))      # (H, 3H)

    return {
        "ws": xavier(ks[0], state_dim, C), "bs": jnp.zeros((C,), jnp.float32),
        "wa": xavier(ks[1], action_dim, C), "ba": jnp.zeros((C,), jnp.float32),
        "wr": xavier(ks[2], 1, C), "br": jnp.zeros((C,), jnp.float32),
        # next_state encoder params exist in the module but are dead for output
        "wn": xavier(ks[3], state_dim, C), "bn": jnp.zeros((C,), jnp.float32),
        "wih_t": wih_t, "bih": jnp.zeros((3 * H,), jnp.float32),
        "whh_t": whh_t, "bhh": jnp.zeros((3 * H,), jnp.float32),
        "wout": xavier(ks[6], H, C), "bout": jnp.zeros((C,), jnp.float32),
    }


# --------------------------- pure-JAX reference -------------------------------
def reference_forward(states, actions, rewards, next_states, p):
    relu = lambda x: jnp.maximum(x, 0.0)
    sig = lambda v: 1.0 / (1.0 + jnp.exp(-v))
    states = states.reshape((-1, *states.shape[-2:]))
    actions = actions.reshape((-1, *actions.shape[-2:]))
    rewards = rewards.reshape((-1, *rewards.shape[-2:]))
    next_states = next_states.reshape((-1, *next_states.shape[-2:]))

    hs = relu(states @ p["ws"] + p["bs"])
    ha = relu(actions @ p["wa"] + p["ba"])
    hr = relu(rewards @ p["wr"] + p["br"])
    _hn = relu(next_states @ p["wn"] + p["bn"])   # dead, mirrors PyTorch
    x = jnp.concatenate([ha, hs, hr], axis=-1)    # (L, B, 3C)

    H = p["whh_t"].shape[0]

    def step(h, x_t):
        gi = x_t @ p["wih_t"] + p["bih"]
        gh = h @ p["whh_t"] + p["bhh"]
        r = sig(gi[:, :H] + gh[:, :H])
        z = sig(gi[:, H:2 * H] + gh[:, H:2 * H])
        n = jnp.tanh(gi[:, 2 * H:] + r * gh[:, 2 * H:])
        return (1.0 - z) * n + z * h, None

    h0 = jnp.zeros((x.shape[1], H), jnp.float32)
    hT, _ = jax.lax.scan(step, h0, x)
    return hT @ p["wout"] + p["bout"]


# --------------------------------- main ---------------------------------------
if __name__ == "__main__":
    L, B = 8, 4
    STATE_DIM, ACTION_DIM = 8, 4
    CONTEXT_DIM, CONTEXT_HIDDEN_DIM = 32, 32

    key = jax.random.PRNGKey(0)
    k_p, k_s, k_a, k_r, k_ns = jax.random.split(key, 5)
    params = init_params(k_p, STATE_DIM, ACTION_DIM, CONTEXT_DIM, CONTEXT_HIDDEN_DIM)

    states = jax.random.normal(k_s, (L, B, STATE_DIM), jnp.float32)
    actions = jax.random.normal(k_a, (L, B, ACTION_DIM), jnp.float32)
    rewards = jax.random.normal(k_r, (L, B, 1), jnp.float32)
    next_states = jax.random.normal(k_ns, (L, B, STATE_DIM), jnp.float32)

    out = general_encoder_forward(states, actions, rewards, next_states, params)
    out = jax.block_until_ready(out)
    assert out.shape == (B, CONTEXT_DIM)

    ref = reference_forward(states, actions, rewards, next_states, params)
    # Tolerance accounts for bf16 MXU operands (equivalent to TPU default
    # matmul precision) and the approx EUP reciprocal compounding over the
    # 8-step recurrence.
    err = float(jnp.max(jnp.abs(out - ref)))
    assert jnp.allclose(out, ref, atol=2e-2, rtol=2e-2), f"mismatch vs reference: {err}"

    print("KERNEL_OK")
</pallas_src>

<mosaic_0001>
module attributes {stable_mosaic.version = 11 : i64} {
  func.func @kernel(%arg0: i32, %arg1: i32, %arg2: memref<128x128xbf16, #tpu.memory_space<vmem>>, %arg3: memref<128x128xbf16, #tpu.memory_space<vmem>>, %arg4: memref<1x128xf32, #tpu.memory_space<vmem>>, %arg5: memref<128x128xbf16, #tpu.memory_space<vmem>>, %arg6: memref<1x128xf32, #tpu.memory_space<vmem>>, %arg7: memref<32x128xbf16, #tpu.memory_space<vmem>>, %arg8: memref<1x128xf32, #tpu.memory_space<vmem>>, %arg9: memref<16x32xf32, #tpu.memory_space<vmem>>, %arg10: memref<128x128xf32, #tpu.memory_space<vmem>>, %arg11: memref<16x32xf32, #tpu.memory_space<vmem>>) attributes {dimension_semantics = [#tpu.dimension_semantics<parallel>, #tpu.dimension_semantics<arbitrary>], iteration_bounds = array<i64: 1, 1>, scalar_prefetch = 0 : i64, scratch_operands = 2 : i64, tpu.core_type = #tpu.core_type<tc>, window_params = [{transform_indices = @transform_0, window_bounds = array<i64: 128, 128>}, {pipeline_mode = #tpu.pipeline_mode<synchronous>, transform_indices = @transform_1, window_bounds = array<i64: 128, 128>}, {pipeline_mode = #tpu.pipeline_mode<synchronous>, transform_indices = @transform_2, window_bounds = array<i64: 1, 128>}, {pipeline_mode = #tpu.pipeline_mode<synchronous>, transform_indices = @transform_3, window_bounds = array<i64: 128, 128>}, {pipeline_mode = #tpu.pipeline_mode<synchronous>, transform_indices = @transform_4, window_bounds = array<i64: 1, 128>}, {pipeline_mode = #tpu.pipeline_mode<synchronous>, transform_indices = @transform_5, window_bounds = array<i64: 32, 128>}, {pipeline_mode = #tpu.pipeline_mode<synchronous>, transform_indices = @transform_6, window_bounds = array<i64: 1, 128>}, {transform_indices = @transform_7, window_bounds = array<i64: 16, 32>}]} {
    %c0_i32 = arith.constant 0 : i32
    %0 = arith.cmpi eq, %arg1, %c0_i32 : i32
    %1 = arith.extui %0 : i1 to i32
    %c0_i32_0 = arith.constant 0 : i32
    %2 = arith.cmpi ne, %1, %c0_i32_0 : i32
    scf.if %2 {
      %cst_57 = arith.constant 0.000000e+00 : f32
      %217 = vector.broadcast %cst_57 : f32 to vector<16x32xf32>
      %c0_58 = arith.constant 0 : index
      %c0_59 = arith.constant 0 : index
      %218 = vector.load %arg11[%c0_58, %c0_59] : memref<16x32xf32, #tpu.memory_space<vmem>>, vector<16x32xf32>
      tpu.vector_store %arg11[%c0_58, %c0_59], %217 {strides = array<i32>} : memref<16x32xf32, #tpu.memory_space<vmem>>, vector<16x32xf32>,
    } else {
    }
    %c0 = arith.constant 0 : index
    %c0_1 = arith.constant 0 : index
    %3 = vector.load %arg2[%c0, %c0_1] : memref<128x128xbf16, #tpu.memory_space<vmem>>, vector<128x128xbf16>
    %c0_2 = arith.constant 0 : index
    %c0_3 = arith.constant 0 : index
    %4 = vector.load %arg3[%c0_2, %c0_3] : memref<128x128xbf16, #tpu.memory_space<vmem>>, vector<128x128xbf16>
    %cst = arith.constant dense<0.000000e+00> : vector<128x128xf32>
    %5 = tpu.matmul %3, %4, %cst {dimension_numbers = #tpu.dot_dimension_numbers<[1], [0], [0], [1], [0, 0, 1, 1], [], []>} : vector<128x128xbf16>, vector<128x128xbf16>, vector<128x128xf32> -> vector<128x128xf32>
    %c0_4 = arith.constant 0 : index
    %c0_5 = arith.constant 0 : index
    %6 = vector.load %arg4[%c0_4, %c0_5] : memref<1x128xf32, #tpu.memory_space<vmem>>, vector<1x128xf32>
    %7 = vector.broadcast %6 : vector<1x128xf32> to vector<128x128xf32>
    %8 = arith.addf %5, %7 : vector<128x128xf32>
    %cst_6 = arith.constant 0.000000e+00 : f32
    %9 = vector.broadcast %cst_6 : f32 to vector<128x128xf32>
    %10 = arith.maximumf %8, %9 : vector<128x128xf32>
    %11 = arith.truncf %10 : vector<128x128xf32> to vector<128x128xbf16>
    %c0_7 = arith.constant 0 : index
    %c0_8 = arith.constant 0 : index
    %12 = vector.load %arg5[%c0_7, %c0_8] : memref<128x128xbf16, #tpu.memory_space<vmem>>, vector<128x128xbf16>
    %cst_9 = arith.constant dense<0.000000e+00> : vector<128x128xf32>
    %13 = tpu.matmul %11, %12, %cst_9 {dimension_numbers = #tpu.dot_dimension_numbers<[1], [0], [0], [1], [0, 0, 1, 1], [], []>} : vector<128x128xbf16>, vector<128x128xbf16>, vector<128x128xf32> -> vector<128x128xf32>
    %c0_10 = arith.constant 0 : index
    %c0_11 = arith.constant 0 : index
    %14 = vector.load %arg6[%c0_10, %c0_11] : memref<1x128xf32, #tpu.memory_space<vmem>>, vector<1x128xf32>
    %15 = vector.broadcast %14 : vector<1x128xf32> to vector<128x128xf32>
    %16 = arith.addf %13, %15 : vector<128x128xf32>
    %c0_12 = arith.constant 0 : index
    %c0_13 = arith.constant 0 : index
    %17 = vector.load %arg10[%c0_12, %c0_13] : memref<128x128xf32, #tpu.memory_space<vmem>>, vector<128x128xf32>
    tpu.vector_store %arg10[%c0_12, %c0_13], %16 {strides = array<i32>} : memref<128x128xf32, #tpu.memory_space<vmem>>, vector<128x128xf32>,
    %c0_14 = arith.constant 0 : index
    %c0_15 = arith.constant 0 : index
    %18 = vector.load %arg7[%c0_14, %c0_15] : memref<32x128xbf16, #tpu.memory_space<vmem>>, vector<32x128xbf16>
    %c0_16 = arith.constant 0 : index
    %c0_17 = arith.constant 0 : index
    %19 = vector.load %arg8[%c0_16, %c0_17] : memref<1x128xf32, #tpu.memory_space<vmem>>, vector<1x128xf32>
    %c0_18 = arith.constant 0 : index
    %c0_19 = arith.constant 0 : index
    %20 = vector.load %arg11[%c0_18, %c0_19] : memref<16x32xf32, #tpu.memory_space<vmem>>, vector<16x32xf32>
    %c0_20 = arith.constant 0 : index
    %c0_21 = arith.constant 0 : index
    %21 = vector.load %arg10[%c0_20, %c0_21] : memref<128x128xf32, #tpu.memory_space<vmem>>, vector<16x128xf32>
    %22 = arith.truncf %20 : vector<16x32xf32> to vector<16x32xbf16>
    %cst_22 = arith.constant dense<0.000000e+00> : vector<16x128xf32>
    %23 = tpu.matmul %22, %18, %cst_22 {dimension_numbers = #tpu.dot_dimension_numbers<[1], [0], [0], [1], [0, 0, 1, 1], [], []>} : vector<16x32xbf16>, vector<32x128xbf16>, vector<16x128xf32> -> vector<16x128xf32>
    %24 = vector.broadcast %19 : vector<1x128xf32> to vector<16x128xf32>
    %25 = arith.addf %23, %24 : vector<16x128xf32>
    %26 = vector.extract_strided_slice %21 {offsets = [0, 0], sizes = [16, 64], strides = [1, 1]} : vector<16x128xf32> to vector<16x64xf32>
    %27 = vector.extract_strided_slice %25 {offsets = [0, 0], sizes = [16, 64], strides = [1, 1]} : vector<16x128xf32> to vector<16x64xf32>
    %28 = arith.addf %26, %27 : vector<16x64xf32>
    %cst_23 = arith.constant 0.000000e+00 : f32
    %29 = vector.broadcast %cst_23 : f32 to vector<16x64xf32>
    %30 = arith.subf %29, %28 : vector<16x64xf32>
    %31 = math.exp %30 : vector<16x64xf32>
    %cst_24 = arith.constant 1.000000e+00 : f32
    %32 = vector.broadcast %cst_24 : f32 to vector<16x64xf32>
    %33 = arith.addf %32, %31 : vector<16x64xf32>
    %34 = tpu.reciprocal %33 {approx = true} : vector<16x64xf32> -> vector<16x64xf32>
    %35 = vector.extract_strided_slice %34 {offsets = [0, 0], sizes = [16, 32], strides = [1, 1]} : vector<16x64xf32> to vector<16x32xf32>
    %36 = vector.extract_strided_slice %34 {offsets = [0, 32], sizes = [16, 32], strides = [1, 1]} : vector<16x64xf32> to vector<16x32xf32>
    %37 = vector.extract_strided_slice %21 {offsets = [0, 64], sizes = [16, 32], strides = [1, 1]} : vector<16x128xf32> to vector<16x32xf32>
    %38 = vector.extract_strided_slice %25 {offsets = [0, 64], sizes = [16, 32], strides = [1, 1]} : vector<16x128xf32> to vector<16x32xf32>
    %39 = arith.mulf %35, %38 : vector<16x32xf32>
    %40 = arith.addf %37, %39 : vector<16x32xf32>
    %41 = math.tanh %40 : vector<16x32xf32>
    %42 = arith.subf %20, %41 : vector<16x32xf32>
    %43 = arith.mulf %36, %42 : vector<16x32xf32>
    %44 = arith.addf %41, %43 : vector<16x32xf32>
    %c16 = arith.constant 16 : index
    %c0_25 = arith.constant 0 : index
    %45 = vector.load %arg10[%c16, %c0_25] : memref<128x128xf32, #tpu.memory_space<vmem>>, vector<16x128xf32>
    %46 = arith.truncf %44 : vector<16x32xf32> to vector<16x32xbf16>
    %cst_26 = arith.constant dense<0.000000e+00> : vector<16x128xf32>
    %47 = tpu.matmul %46, %18, %cst_26 {dimension_numbers = #tpu.dot_dimension_numbers<[1], [0], [0], [1], [0, 0, 1, 1], [], []>} : vector<16x32xbf16>, vector<32x128xbf16>, vector<16x128xf32> -> vector<16x128xf32>
    %48 = vector.broadcast %19 : vector<1x128xf32> to vector<16x128xf32>
    %49 = arith.addf %47, %48 : vector<16x128xf32>
    %50 = vector.extract_strided_slice %45 {offsets = [0, 0], sizes = [16, 64], strides = [1, 1]} : vector<16x128xf32> to vector<16x64xf32>
    %51 = vector.extract_strided_slice %49 {offsets = [0, 0], sizes = [16, 64], strides = [1, 1]} : vector<16x128xf32> to vector<16x64xf32>
    %52 = arith.addf %50, %51 : vector<16x64xf32>
    %cst_27 = arith.constant 0.000000e+00 : f32
    %53 = vector.broadcast %cst_27 : f32 to vector<16x64xf32>
    %54 = arith.subf %53, %52 : vector<16x64xf32>
    %55 = math.exp %54 : vector<16x64xf32>
    %cst_28 = arith.constant 1.000000e+00 : f32
    %56 = vector.broadcast %cst_28 : f32 to vector<16x64xf32>
    %57 = arith.addf %56, %55 : vector<16x64xf32>
    %58 = tpu.reciprocal %57 {approx = true} : vector<16x64xf32> -> vector<16x64xf32>
    %59 = vector.extract_strided_slice %58 {offsets = [0, 0], sizes = [16, 32], strides = [1, 1]} : vector<16x64xf32> to vector<16x32xf32>
    %60 = vector.extract_strided_slice %58 {offsets = [0, 32], sizes = [16, 32], strides = [1, 1]} : vector<16x64xf32> to vector<16x32xf32>
    %61 = vector.extract_strided_slice %45 {offsets = [0, 64], sizes = [16, 32], strides = [1, 1]} : vector<16x128xf32> to vector<16x32xf32>
    %62 = vector.extract_strided_slice %49 {offsets = [0, 64], sizes = [16, 32], strides = [1, 1]} : vector<16x128xf32> to vector<16x32xf32>
    %63 = arith.mulf %59, %62 : vector<16x32xf32>
    %64 = arith.addf %61, %63 : vector<16x32xf32>
    %65 = math.tanh %64 : vector<16x32xf32>
    %66 = arith.subf %44, %65 : vector<16x32xf32>
    %67 = arith.mulf %60, %66 : vector<16x32xf32>
    %68 = arith.addf %65, %67 : vector<16x32xf32>
    %c32 = arith.constant 32 : index
    %c0_29 = arith.constant 0 : index
    %69 = vector.load %arg10[%c32, %c0_29] : memref<128x128xf32, #tpu.memory_space<vmem>>, vector<16x128xf32>
    %70 = arith.truncf %68 : vector<16x32xf32> to vector<16x32xbf16>
    %cst_30 = arith.constant dense<0.000000e+00> : vector<16x128xf32>
    %71 = tpu.matmul %70, %18, %cst_30 {dimension_numbers = #tpu.dot_dimension_numbers<[1], [0], [0], [1], [0, 0, 1, 1], [], []>} : vector<16x32xbf16>, vector<32x128xbf16>, vector<16x128xf32> -> vector<16x128xf32>
    %72 = vector.broadcast %19 : vector<1x128xf32> to vector<16x128xf32>
    %73 = arith.addf %71, %72 : vector<16x128xf32>
    %74 = vector.extract_strided_slice %69 {offsets = [0, 0], sizes = [16, 64], strides = [1, 1]} : vector<16x128xf32> to vector<16x64xf32>
    %75 = vector.extract_strided_slice %73 {offsets = [0, 0], sizes = [16, 64], strides = [1, 1]} : vector<16x128xf32> to vector<16x64xf32>
    %76 = arith.addf %74, %75 : vector<16x64xf32>
    %cst_31 = arith.constant 0.000000e+00 : f32
    %77 = vector.broadcast %cst_31 : f32 to vector<16x64xf32>
    %78 = arith.subf %77, %76 : vector<16x64xf32>
    %79 = math.exp %78 : vector<16x64xf32>
    %cst_32 = arith.constant 1.000000e+00 : f32
    %80 = vector.broadcast %cst_32 : f32 to vector<16x64xf32>
    %81 = arith.addf %80, %79 : vector<16x64xf32>
    %82 = tpu.reciprocal %81 {approx = true} : vector<16x64xf32> -> vector<16x64xf32>
    %83 = vector.extract_strided_slice %82 {offsets = [0, 0], sizes = [16, 32], strides = [1, 1]} : vector<16x64xf32> to vector<16x32xf32>
    %84 = vector.extract_strided_slice %82 {offsets = [0, 32], sizes = [16, 32], strides = [1, 1]} : vector<16x64xf32> to vector<16x32xf32>
    %85 = vector.extract_strided_slice %69 {offsets = [0, 64], sizes = [16, 32], strides = [1, 1]} : vector<16x128xf32> to vector<16x32xf32>
    %86 = vector.extract_strided_slice %73 {offsets = [0, 64], sizes = [16, 32], strides = [1, 1]} : vector<16x128xf32> to vector<16x32xf32>
    %87 = arith.mulf %83, %86 : vector<16x32xf32>
    %88 = arith.addf %85, %87 : vector<16x32xf32>
    %89 = math.tanh %88 : vector<16x32xf32>
    %90 = arith.subf %68, %89 : vector<16x32xf32>
    %91 = arith.mulf %84, %90 : vector<16x32xf32>
    %92 = arith.addf %89, %91 : vector<16x32xf32>
    %c48 = arith.constant 48 : index
    %c0_33 = arith.constant 0 : index
    %93 = vector.load %arg10[%c48, %c0_33] : memref<128x128xf32, #tpu.memory_space<vmem>>, vector<16x128xf32>
    %94 = arith.truncf %92 : vector<16x32xf32> to vector<16x32xbf16>
    %cst_34 = arith.constant dense<0.000000e+00> : vector<16x128xf32>
    %95 = tpu.matmul %94, %18, %cst_34 {dimension_numbers = #tpu.dot_dimension_numbers<[1], [0], [0], [1], [0, 0, 1, 1], [], []>} : vector<16x32xbf16>, vector<32x128xbf16>, vector<16x128xf32> -> vector<16x128xf32>
    %96 = vector.broadcast %19 : vector<1x128xf32> to vector<16x128xf32>
    %97 = arith.addf %95, %96 : vector<16x128xf32>
    %98 = vector.extract_strided_slice %93 {offsets = [0, 0], sizes = [16, 64], strides = [1, 1]} : vector<16x128xf32> to vector<16x64xf32>
    %99 = vector.extract_strided_slice %97 {offsets = [0, 0], sizes = [16, 64], strides = [1, 1]} : vector<16x128xf32> to vector<16x64xf32>
    %100 = arith.addf %98, %99 : vector<16x64xf32>
    %cst_35 = arith.constant 0.000000e+00 : f32
    %101 = vector.broadcast %cst_35 : f32 to vector<16x64xf32>
    %102 = arith.subf %101, %100 : vector<16x64xf32>
    %103 = math.exp %102 : vector<16x64xf32>
    %cst_36 = arith.constant 1.000000e+00 : f32
    %104 = vector.broadcast %cst_36 : f32 to vector<16x64xf32>
    %105 = arith.addf %104, %103 : vector<16x64xf32>
    %106 = tpu.reciprocal %105 {approx = true} : vector<16x64xf32> -> vector<16x64xf32>
    %107 = vector.extract_strided_slice %106 {offsets = [0, 0], sizes = [16, 32], strides = [1, 1]} : vector<16x64xf32> to vector<16x32xf32>
    %108 = vector.extract_strided_slice %106 {offsets = [0, 32], sizes = [16, 32], strides = [1, 1]} : vector<16x64xf32> to vector<16x32xf32>
    %109 = vector.extract_strided_slice %93 {offsets = [0, 64], sizes = [16, 32], strides = [1, 1]} : vector<16x128xf32> to vector<16x32xf32>
    %110 = vector.extract_strided_slice %97 {offsets = [0, 64], sizes = [16, 32], strides = [1, 1]} : vector<16x128xf32> to vector<16x32xf32>
    %111 = arith.mulf %107, %110 : vector<16x32xf32>
    %112 = arith.addf %109, %111 : vector<16x32xf32>
    %113 = math.tanh %112 : vector<16x32xf32>
    %114 = arith.subf %92, %113 : vector<16x32xf32>
    %115 = arith.mulf %108, %114 : vector<16x32xf32>
    %116 = arith.addf %113, %115 : vector<16x32xf32>
    %c64 = arith.constant 64 : index
    %c0_37 = arith.constant 0 : index
    %117 = vector.load %arg10[%c64, %c0_37] : memref<128x128xf32, #tpu.memory_space<vmem>>, vector<16x128xf32>
    %118 = arith.truncf %116 : vector<16x32xf32> to vector<16x32xbf16>
    %cst_38 = arith.constant dense<0.000000e+00> : vector<16x128xf32>
    %119 = tpu.matmul %118, %18, %cst_38 {dimension_numbers = #tpu.dot_dimension_numbers<[1], [0], [0], [1], [0, 0, 1, 1], [], []>} : vector<16x32xbf16>, vector<32x128xbf16>, vector<16x128xf32> -> vector<16x128xf32>
    %120 = vector.broadcast %19 : vector<1x128xf32> to vector<16x128xf32>
    %121 = arith.addf %119, %120 : vector<16x128xf32>
    %122 = vector.extract_strided_slice %117 {offsets = [0, 0], sizes = [16, 64], strides = [1, 1]} : vector<16x128xf32> to vector<16x64xf32>
    %123 = vector.extract_strided_slice %121 {offsets = [0, 0], sizes = [16, 64], strides = [1, 1]} : vector<16x128xf32> to vector<16x64xf32>
    %124 = arith.addf %122, %123 : vector<16x64xf32>
    %cst_39 = arith.constant 0.000000e+00 : f32
    %125 = vector.broadcast %cst_39 : f32 to vector<16x64xf32>
    %126 = arith.subf %125, %124 : vector<16x64xf32>
    %127 = math.exp %126 : vector<16x64xf32>
    %cst_40 = arith.constant 1.000000e+00 : f32
    %128 = vector.broadcast %cst_40 : f32 to vector<16x64xf32>
    %129 = arith.addf %128, %127 : vector<16x64xf32>
    %130 = tpu.reciprocal %129 {approx = true} : vector<16x64xf32> -> vector<16x64xf32>
    %131 = vector.extract_strided_slice %130 {offsets = [0, 0], sizes = [16, 32], strides = [1, 1]} : vector<16x64xf32> to vector<16x32xf32>
    %132 = vector.extract_strided_slice %130 {offsets = [0, 32], sizes = [16, 32], strides = [1, 1]} : vector<16x64xf32> to vector<16x32xf32>
    %133 = vector.extract_strided_slice %117 {offsets = [0, 64], sizes = [16, 32], strides = [1, 1]} : vector<16x128xf32> to vector<16x32xf32>
    %134 = vector.extract_strided_slice %121 {offsets = [0, 64], sizes = [16, 32], strides = [1, 1]} : vector<16x128xf32> to vector<16x32xf32>
    %135 = arith.mulf %131, %134 : vector<16x32xf32>
    %136 = arith.addf %133, %135 : vector<16x32xf32>
    %137 = math.tanh %136 : vector<16x32xf32>
    %138 = arith.subf %116, %137 : vector<16x32xf32>
    %139 = arith.mulf %132, %138 : vector<16x32xf32>
    %140 = arith.addf %137, %139 : vector<16x32xf32>
    %c80 = arith.constant 80 : index
    %c0_41 = arith.constant 0 : index
    %141 = vector.load %arg10[%c80, %c0_41] : memref<128x128xf32, #tpu.memory_space<vmem>>, vector<16x128xf32>
    %142 = arith.truncf %140 : vector<16x32xf32> to vector<16x32xbf16>
    %cst_42 = arith.constant dense<0.000000e+00> : vector<16x128xf32>
    %143 = tpu.matmul %142, %18, %cst_42 {dimension_numbers = #tpu.dot_dimension_numbers<[1], [0], [0], [1], [0, 0, 1, 1], [], []>} : vector<16x32xbf16>, vector<32x128xbf16>, vector<16x128xf32> -> vector<16x128xf32>
    %144 = vector.broadcast %19 : vector<1x128xf32> to vector<16x128xf32>
    %145 = arith.addf %143, %144 : vector<16x128xf32>
    %146 = vector.extract_strided_slice %141 {offsets = [0, 0], sizes = [16, 64], strides = [1, 1]} : vector<16x128xf32> to vector<16x64xf32>
    %147 = vector.extract_strided_slice %145 {offsets = [0, 0], sizes = [16, 64], strides = [1, 1]} : vector<16x128xf32> to vector<16x64xf32>
    %148 = arith.addf %146, %147 : vector<16x64xf32>
    %cst_43 = arith.constant 0.000000e+00 : f32
    %149 = vector.broadcast %cst_43 : f32 to vector<16x64xf32>
    %150 = arith.subf %149, %148 : vector<16x64xf32>
    %151 = math.exp %150 : vector<16x64xf32>
    %cst_44 = arith.constant 1.000000e+00 : f32
    %152 = vector.broadcast %cst_44 : f32 to vector<16x64xf32>
    %153 = arith.addf %152, %151 : vector<16x64xf32>
    %154 = tpu.reciprocal %153 {approx = true} : vector<16x64xf32> -> vector<16x64xf32>
    %155 = vector.extract_strided_slice %154 {offsets = [0, 0], sizes = [16, 32], strides = [1, 1]} : vector<16x64xf32> to vector<16x32xf32>
    %156 = vector.extract_strided_slice %154 {offsets = [0, 32], sizes = [16, 32], strides = [1, 1]} : vector<16x64xf32> to vector<16x32xf32>
    %157 = vector.extract_strided_slice %141 {offsets = [0, 64], sizes = [16, 32], strides = [1, 1]} : vector<16x128xf32> to vector<16x32xf32>
    %158 = vector.extract_strided_slice %145 {offsets = [0, 64], sizes = [16, 32], strides = [1, 1]} : vector<16x128xf32> to vector<16x32xf32>
    %159 = arith.mulf %155, %158 : vector<16x32xf32>
    %160 = arith.addf %157, %159 : vector<16x32xf32>
    %161 = math.tanh %160 : vector<16x32xf32>
    %162 = arith.subf %140, %161 : vector<16x32xf32>
    %163 = arith.mulf %156, %162 : vector<16x32xf32>
    %164 = arith.addf %161, %163 : vector<16x32xf32>
    %c96 = arith.constant 96 : index
    %c0_45 = arith.constant 0 : index
    %165 = vector.load %arg10[%c96, %c0_45] : memref<128x128xf32, #tpu.memory_space<vmem>>, vector<16x128xf32>
    %166 = arith.truncf %164 : vector<16x32xf32> to vector<16x32xbf16>
    %cst_46 = arith.constant dense<0.000000e+00> : vector<16x128xf32>
    %167 = tpu.matmul %166, %18, %cst_46 {dimension_numbers = #tpu.dot_dimension_numbers<[1], [0], [0], [1], [0, 0, 1, 1], [], []>} : vector<16x32xbf16>, vector<32x128xbf16>, vector<16x128xf32> -> vector<16x128xf32>
    %168 = vector.broadcast %19 : vector<1x128xf32> to vector<16x128xf32>
    %169 = arith.addf %167, %168 : vector<16x128xf32>
    %170 = vector.extract_strided_slice %165 {offsets = [0, 0], sizes = [16, 64], strides = [1, 1]} : vector<16x128xf32> to vector<16x64xf32>
    %171 = vector.extract_strided_slice %169 {offsets = [0, 0], sizes = [16, 64], strides = [1, 1]} : vector<16x128xf32> to vector<16x64xf32>
    %172 = arith.addf %170, %171 : vector<16x64xf32>
    %cst_47 = arith.constant 0.000000e+00 : f32
    %173 = vector.broadcast %cst_47 : f32 to vector<16x64xf32>
    %174 = arith.subf %173, %172 : vector<16x64xf32>
    %175 = math.exp %174 : vector<16x64xf32>
    %cst_48 = arith.constant 1.000000e+00 : f32
    %176 = vector.broadcast %cst_48 : f32 to vector<16x64xf32>
    %177 = arith.addf %176, %175 : vector<16x64xf32>
    %178 = tpu.reciprocal %177 {approx = true} : vector<16x64xf32> -> vector<16x64xf32>
    %179 = vector.extract_strided_slice %178 {offsets = [0, 0], sizes = [16, 32], strides = [1, 1]} : vector<16x64xf32> to vector<16x32xf32>
    %180 = vector.extract_strided_slice %178 {offsets = [0, 32], sizes = [16, 32], strides = [1, 1]} : vector<16x64xf32> to vector<16x32xf32>
    %181 = vector.extract_strided_slice %165 {offsets = [0, 64], sizes = [16, 32], strides = [1, 1]} : vector<16x128xf32> to vector<16x32xf32>
    %182 = vector.extract_strided_slice %169 {offsets = [0, 64], sizes = [16, 32], strides = [1, 1]} : vector<16x128xf32> to vector<16x32xf32>
    %183 = arith.mulf %179, %182 : vector<16x32xf32>
    %184 = arith.addf %181, %183 : vector<16x32xf32>
    %185 = math.tanh %184 : vector<16x32xf32>
    %186 = arith.subf %164, %185 : vector<16x32xf32>
    %187 = arith.mulf %180, %186 : vector<16x32xf32>
    %188 = arith.addf %185, %187 : vector<16x32xf32>
    %c112 = arith.constant 112 : index
    %c0_49 = arith.constant 0 : index
    %189 = vector.load %arg10[%c112, %c0_49] : memref<128x128xf32, #tpu.memory_space<vmem>>, vector<16x128xf32>
    %190 = arith.truncf %188 : vector<16x32xf32> to vector<16x32xbf16>
    %cst_50 = arith.constant dense<0.000000e+00> : vector<16x128xf32>
    %191 = tpu.matmul %190, %18, %cst_50 {dimension_numbers = #tpu.dot_dimension_numbers<[1], [0], [0], [1], [0, 0, 1, 1], [], []>} : vector<16x32xbf16>, vector<32x128xbf16>, vector<16x128xf32> -> vector<16x128xf32>
    %192 = vector.broadcast %19 : vector<1x128xf32> to vector<16x128xf32>
    %193 = arith.addf %191, %192 : vector<16x128xf32>
    %194 = vector.extract_strided_slice %189 {offsets = [0, 0], sizes = [16, 64], strides = [1, 1]} : vector<16x128xf32> to vector<16x64xf32>
    %195 = vector.extract_strided_slice %193 {offsets = [0, 0], sizes = [16, 64], strides = [1, 1]} : vector<16x128xf32> to vector<16x64xf32>
    %196 = arith.addf %194, %195 : vector<16x64xf32>
    %cst_51 = arith.constant 0.000000e+00 : f32
    %197 = vector.broadcast %cst_51 : f32 to vector<16x64xf32>
    %198 = arith.subf %197, %196 : vector<16x64xf32>
    %199 = math.exp %198 : vector<16x64xf32>
    %cst_52 = arith.constant 1.000000e+00 : f32
    %200 = vector.broadcast %cst_52 : f32 to vector<16x64xf32>
    %201 = arith.addf %200, %199 : vector<16x64xf32>
    %202 = tpu.reciprocal %201 {approx = true} : vector<16x64xf32> -> vector<16x64xf32>
    %203 = vector.extract_strided_slice %202 {offsets = [0, 0], sizes = [16, 32], strides = [1, 1]} : vector<16x64xf32> to vector<16x32xf32>
    %204 = vector.extract_strided_slice %202 {offsets = [0, 32], sizes = [16, 32], strides = [1, 1]} : vector<16x64xf32> to vector<16x32xf32>
    %205 = vector.extract_strided_slice %189 {offsets = [0, 64], sizes = [16, 32], strides = [1, 1]} : vector<16x128xf32> to vector<16x32xf32>
    %206 = vector.extract_strided_slice %193 {offsets = [0, 64], sizes = [16, 32], strides = [1, 1]} : vector<16x128xf32> to vector<16x32xf32>
    %207 = arith.mulf %203, %206 : vector<16x32xf32>
    %208 = arith.addf %205, %207 : vector<16x32xf32>
    %209 = math.tanh %208 : vector<16x32xf32>
    %210 = arith.subf %188, %209 : vector<16x32xf32>
    %211 = arith.mulf %204, %210 : vector<16x32xf32>
    %212 = arith.addf %209, %211 : vector<16x32xf32>
    %c0_53 = arith.constant 0 : index
    %c0_54 = arith.constant 0 : index
    %213 = vector.load %arg11[%c0_53, %c0_54] : memref<16x32xf32, #tpu.memory_space<vmem>>, vector<16x32xf32>
    tpu.vector_store %arg11[%c0_53, %c0_54], %212 {strides = array<i32>} : memref<16x32xf32, #tpu.memory_space<vmem>>, vector<16x32xf32>,
    %c0_i32_55 = arith.constant 0 : i32
    %214 = arith.cmpi eq, %arg1, %c0_i32_55 : i32
    %215 = arith.extui %214 : i1 to i32
    %c0_i32_56 = arith.constant 0 : i32
    %216 = arith.cmpi ne, %215, %c0_i32_56 : i32
    scf.if %216 {
      %c0_57 = arith.constant 0 : index
      %c0_58 = arith.constant 0 : index
      %217 = vector.load %arg9[%c0_57, %c0_58] : memref<16x32xf32, #tpu.memory_space<vmem>>, vector<16x32xf32>
      tpu.vector_store %arg9[%c0_57, %c0_58], %212 {strides = array<i32>} : memref<16x32xf32, #tpu.memory_space<vmem>>, vector<16x32xf32>,
    } else {
    }
    return
  }
  func.func @transform_0(%arg0: i32, %arg1: i32) -> (i32, i32) {
    %c1_i32 = arith.constant 1 : i32
    %0 = arith.muli %arg0, %c1_i32 : i32
    %1 = arith.addi %0, %arg1 : i32
    %c0_i32 = arith.constant 0 : i32
    %c0_i32_0 = arith.constant 0 : i32
    return %1, %c0_i32 : i32, i32
  }
  func.func @transform_1(%arg0: i32, %arg1: i32) -> (i32, i32) {
    %c0_i32 = arith.constant 0 : i32
    %c0_i32_0 = arith.constant 0 : i32
    %c0_i32_1 = arith.constant 0 : i32
    return %c0_i32, %c0_i32_0 : i32, i32
  }
  func.func @transform_2(%arg0: i32, %arg1: i32) -> (i32, i32) {
    %c0_i32 = arith.constant 0 : i32
    %c0_i32_0 = arith.constant 0 : i32
    %c0_i32_1 = arith.constant 0 : i32
    return %c0_i32, %c0_i32_0 : i32, i32
  }
  func.func @transform_3(%arg0: i32, %arg1: i32) -> (i32, i32) {
    %c0_i32 = arith.constant 0 : i32
    %c0_i32_0 = arith.constant 0 : i32
    %c0_i32_1 = arith.constant 0 : i32
    return %c0_i32, %c0_i32_0 : i32, i32
  }
  func.func @transform_4(%arg0: i32, %arg1: i32) -> (i32, i32) {
    %c0_i32 = arith.constant 0 : i32
    %c0_i32_0 = arith.constant 0 : i32
    %c0_i32_1 = arith.constant 0 : i32
    return %c0_i32, %c0_i32_0 : i32, i32
  }
  func.func @transform_5(%arg0: i32, %arg1: i32) -> (i32, i32) {
    %c0_i32 = arith.constant 0 : i32
    %c0_i32_0 = arith.constant 0 : i32
    %c0_i32_1 = arith.constant 0 : i32
    return %c0_i32, %c0_i32_0 : i32, i32
  }
  func.func @transform_6(%arg0: i32, %arg1: i32) -> (i32, i32) {
    %c0_i32 = arith.constant 0 : i32
    %c0_i32_0 = arith.constant 0 : i32
    %c0_i32_1 = arith.constant 0 : i32
    return %c0_i32, %c0_i32_0 : i32, i32
  }
  func.func @transform_7(%arg0: i32, %arg1: i32) -> (i32, i32) {
    %c0_i32 = arith.constant 0 : i32
    %c0_i32_0 = arith.constant 0 : i32
    return %arg0, %c0_i32 : i32, i32
  }
}

</mosaic_0001>

<bundles_post_ra>
// kernel: tpu_custom_call.1
= control target key start
LH: loop header
LB: loop body
LE: loop exit
PB: predicated region body
PF: predicated region fallthrough
CT: control target
= control target key end

     0   :  { %12 = vsyncpa [#allocation5], 0  ;;  %s1802_s0 = inlined_call_operand.hbm [shape: bf16[128,128], index: 0, kind: input, shape index: {}]   ;;  %s1803_s1 = inlined_call_operand.hbm [shape: bf16[128,128], index: 1, kind: input, shape index: {}]   ;;  %s1804_s2 = inlined_call_operand.vmem [shape: f32[1,128], index: 2, kind: input, shape index: {}]   ;;  %s1805_s3 = inlined_call_operand.hbm [shape: bf16[128,128], index: 3, kind: input, shape index: {}]   ;;  %s1806_s4 = inlined_call_operand.vmem [shape: f32[1,128], index: 4, kind: input, shape index: {}]   ;;  %s1807_s5 = inlined_call_operand.hbm [shape: bf16[32,128], index: 5, kind: input, shape index: {}]   ;;  %s1808_s6 = inlined_call_operand.vmem [shape: f32[1,128], index: 6, kind: input, shape index: {}]   ;;  %s1809_s7 = inlined_call_operand.hbm [shape: f32[16,32], index: 7, kind: output, shape index: {}]  }
   0x1   :  { %13 = vsyncpa [#allocation8], 0 }
   0x2   :  { %14 = vsyncpa [#allocation11], 0 }
   0x3   :  { %15 = vsyncpa [#allocation6], 0  ;;  %s37_s26 = sshll.u32 %s1803_s1, 4  ;;  %s1531_s27 = smov [#allocation7]   ;;  %s38_s26 = int_to_ptr.hbm [resolvable:$true] %s37_s26 }
   0x4   :  { %s39_s28 = sshll.u32 %s1531_s27, 4  ;;  %s24_s8 = sshll.u32 %s1802_s0, 4  ;;  %s40_s28 = int_to_ptr.vmem [resolvable:$true] %s39_s28  ;;  %s25_s8 = int_to_ptr.hbm [resolvable:$true] %s24_s8 }
   0x5   :  { %s1532_s9 = smov 64   ;;  %s1533_s10 = smov 4  }
   0x6   :  { %45 = dma.hbm_to_vmem [thread:$0]  %s38_s26, 1024, %s40_s28, [#allocation8], %s1532_s9, %s1532_s9, %s1533_s10  }
   0x7   :  { %s1534_s11 = smov [#allocation4]   ;;  %s52_s1 = sshll.u32 %s1805_s3, 4  ;;  %s53_s1 = int_to_ptr.hbm [resolvable:$true] %s52_s1 }
   0x8   :  { %s26_s12 = sshll.u32 %s1534_s11, 4  ;;  %s67_s0 = sshll.u32 %s1807_s5, 4  ;;  %s27_s12 = int_to_ptr.vmem [resolvable:$true] %s26_s12  ;;  %s68_s0 = int_to_ptr.hbm [resolvable:$true] %s67_s0 }
   0x9   :  { %32 = dma.hbm_to_vmem [thread:$0]  %s25_s8, 1024, %s27_s12, [#allocation5], %s1532_s9, %s1532_s9, %s1533_s10  }
   0xa   :  { %s1535_s17 = smov [#allocation9]   ;;  %s1536_s19 = smov [#allocation10]  }
   0xb   :  { %s54_s18 = sshll.u32 %s1535_s17, 4  ;;  %s69_s20 = sshll.u32 %s1536_s19, 4  ;;  %s55_s18 = int_to_ptr.vmem [resolvable:$true] %s54_s18  ;;  %s70_s20 = int_to_ptr.vmem [resolvable:$true] %s69_s20 }
   0xc   :  { %60 = dma.hbm_to_vmem [thread:$0]  %s53_s1, 1024, %s55_s18, [#allocation8], %s1532_s9, %s1532_s9, %s1533_s10  }
   0xd   :  { %75 = dma.hbm_to_vmem [thread:$0]  %s68_s0, 256, %s70_s20, [#allocation11], %s1532_s9, %s1532_s9, %s1533_s10  }
   0xe   :  { %1523 = dma.done.wait [#allocation5], 1024  }
   0xf   :  { %1524 = vsyncadd [#allocation5], 4294966272 }
  0x10   :  { %1525 = dma.done.wait [#allocation8], 2048  }
  0x11   :  { %1526 = vsyncadd [#allocation8], 4294965248 }
  0x12   :  { %1527 = dma.done.wait [#allocation11], 256  }
  0x13   :  { %1528 = vsyncadd [#allocation11], 4294967040  ;;  %v1265_v0 = vld [vmem:[#allocation7 + $0x38] sm:$0xff]  ;;  %v1264_v1 = vld [vmem:[#allocation7 + $0x30] sm:$0xff]  ;;  %vm101_vm0 = vcmask 261120   ;;  %v1537_v6 = vmov 0.0  }
  0x14   :  { %236 = vmatpush.bf16.msra.mxu0 %v1265_v0  ;;  %1276 = vmatpush.bf16.msra.mxu2 %v1265_v0  ;;  %v1263_v2 = vld [vmem:[#allocation7 + $0x28] sm:$0xff]  ;;  %v1262_v3 = vld [vmem:[#allocation7 + $0x20] sm:$0xff]  ;;  %v1261_v4 = vld [vmem:[#allocation7 + $0x18] sm:$0xff]  ;;  %102 = vst.msk [vmem:[#allocation3] sm:$0xff] %vm101_vm0, %v1537_v6  ;;  %s1540_s24 = smov [#allocation12]   ;;  %s1123_s28 = sshll.u32 %s1809_s7, 4  ;;  %s1124_s28 = int_to_ptr.hbm [resolvable:$true] %s1123_s28 }
  0x15   :  { %v1260_v5 = vld [vmem:[#allocation7 + $0x10] sm:$0xff]  ;;  %103 = vst.msk [vmem:[#allocation3 + $0x8] sm:$0xff] %vm101_vm0, %v1537_v6  ;;  %v1259_v7 = vld [vmem:[#allocation7 + $0x8] sm:$0xff]  ;;  %v1258_v8 = vld [vmem:[#allocation7] sm:$0xff]  ;;  %s1121_s25 = sshll.u32 %s1540_s24, 4  ;;  %s1541_s29 = smov 128   ;;  %s1122_s25 = int_to_ptr.vmem [resolvable:$true] %s1121_s25 }
  0x16   :  { %v1605_v9 = vld [vmem:[#allocation10 + $0x8] sm:$0xff]  ;;  %v1250_v10 = vld [vmem:[#allocation4] sm:$0xff]  ;;  %v1256_v11 = vld [vmem:[#allocation4 + $0x30] sm:$0xff]  ;;  %s1542_s30 = smov 8  }
  0x17   :  { %v1608_v12 = vld [vmem:[#allocation10] sm:$0xff]  ;;  %v1273_v13 = vld [vmem:[#allocation9 + $0x38] sm:$0xff]  ;;  %v1272_v14 = vld [vmem:[#allocation9 + $0x30] sm:$0xff] }
  0x18   :  { %237 = vmatpush.bf16.msra.mxu0 %v1264_v1  ;;  %1277 = vmatpush.bf16.msra.mxu2 %v1264_v1  ;;  %v1271_v15 = vld [vmem:[#allocation9 + $0x28] sm:$0xff]  ;;  %v1270_v16 = vld [vmem:[#allocation9 + $0x20] sm:$0xff]  ;;  %v1257_v17 = vld [vmem:[#allocation4 + $0x38] sm:$0xff] }
  0x19   :  { %377 = vmatpush.bf16.msra.mxu1 %v1273_v13  ;;  %1284 = vmatpush.bf16.msra.mxu3 %v1273_v13  ;;  %v1269_v21 = vld [vmem:[#allocation9 + $0x18] sm:$0xff]  ;;  %v1268_v22 = vld [vmem:[#allocation9 + $0x10] sm:$0xff]  ;;  %v1267_v23 = vld [vmem:[#allocation9 + $0x8] sm:$0xff] }
  0x1a   :  { %v1266_v24 = vld [vmem:[#allocation9] sm:$0xff]  ;;  %v1627_v26 = vld [vmem:[%s1804_s2] ss:$0 sm:$0xff] }
  0x1b   :  { %v1613_v18 = vld [vmem:[#allocation3] sm:$0xff] }
  0x1c   :  { %238 = vmatpush.bf16.msra.mxu0 %v1263_v2  ;;  %1278 = vmatpush.bf16.msra.mxu2 %v1263_v2  ;;  %v1615_v19 = vld [vmem:[#allocation3 + $0x8] sm:$0xff]  ;;  %v1640_v47 = vld [vmem:[%s1808_s6] ss:$0 sm:$0xff]  ;;  %s1539_s6 = smov 96  }
  0x1d   :  { %378 = vmatpush.bf16.msra.mxu1 %v1272_v14  ;;  %1285 = vmatpush.bf16.msra.mxu3 %v1272_v14  ;;  %v451_v20 = vpack.c.bf16 %v1615_v19, %v1613_v18  ;;  %v1649_v52 = vld [vmem:[%s1806_s4] ss:$0 sm:$0xff]  ;;  %s1538_s4 = smov 32  }
  0x20   :  { %239 = vmatpush.bf16.msra.mxu0 %v1262_v3  ;;  %1279 = vmatpush.bf16.msra.mxu2 %v1262_v3 }
  0x21   :  { %379 = vmatpush.bf16.msra.mxu1 %v1271_v15  ;;  %1286 = vmatpush.bf16.msra.mxu3 %v1271_v15 }
  0x24   :  { %240 = vmatpush.bf16.msra.mxu0 %v1261_v4  ;;  %1280 = vmatpush.bf16.msra.mxu2 %v1261_v4 }
  0x25   :  { %380 = vmatpush.bf16.msra.mxu1 %v1270_v16  ;;  %1287 = vmatpush.bf16.msra.mxu3 %v1270_v16 }
  0x28   :  { %241 = vmatpush.bf16.msra.mxu0 %v1260_v5  ;;  %1281 = vmatpush.bf16.msra.mxu2 %v1260_v5 }
  0x29   :  { %381 = vmatpush.bf16.msra.mxu1 %v1269_v21  ;;  %1288 = vmatpush.bf16.msra.mxu3 %v1269_v21 }
  0x2c   :  { %242 = vmatpush.bf16.msra.mxu0 %v1259_v7  ;;  %1282 = vmatpush.bf16.msra.mxu2 %v1259_v7 }
  0x2d   :  { %382 = vmatpush.bf16.msra.mxu1 %v1268_v22  ;;  %1289 = vmatpush.bf16.msra.mxu3 %v1268_v22 }
  0x30   :  { %243 = vmatpush.bf16.msra.mxu0 %v1258_v8  ;;  %1283 = vmatpush.bf16.msra.mxu2 %v1258_v8 }
  0x31   :  { %383 = vmatpush.bf16.msra.mxu1 %v1267_v23  ;;  %1290 = vmatpush.bf16.msra.mxu3 %v1267_v23 }
  0x33   :  { %244 = vmatmul.bf16.vlgmr.msra.gmra.mxu0 %v1250_v10  ;;  %274 = vmatmul.bf16.vlgmr.msra.gmra.mxu2 %v1256_v11 }
  0x34   :  { %477 = vmatpush.bf16.msrb.mxu2 %v1605_v9 }
  0x35   :  { %384 = vmatpush.bf16.msra.mxu1 %v1266_v24  ;;  %1291 = vmatpush.bf16.msra.mxu3 %v1266_v24 }
  0x38   :  { %478 = vmatpush.bf16.msrb.mxu2 %v1608_v12 }
  0x39   :  { %564 = vmatpush.bf16.msrb.mxu3 %v1605_v9 }
  0x3c   :  { %643 = vmatpush.bf16.msra.mxu2 %v1605_v9 }
  0x3d   :  { %565 = vmatpush.bf16.msrb.mxu3 %v1608_v12 }
  0x40   :  { %644 = vmatpush.bf16.msra.mxu2 %v1608_v12 }
  0x43   :  { %279 = vmatmul.bf16.gmra.mxu2 %v1257_v17 }
  0x53   :  { %1242 = vmatmul.msk.bf16.vlgmr.msrb.gmra.mxu2 %vm101_vm0, %v451_v20 }
  0x54   :  { %801 = vmatpush.bf16.msrb.mxu2 %v1605_v9 }
  0x58   :  { %802 = vmatpush.bf16.msrb.mxu2 %v1608_v12 }
  0xb0   :  { %v245_v25 = vpop.f32.mrf.mxu0 }
  0xb1   :  { %v246_v28 = vadd.f32 %v1627_v26, %v245_v25 }
  0xb3   :  { %v285_v31 = vmax.f32 %v246_v28, 0.0  ;;  %v1251_v28 = vld [vmem:[#allocation4 + $0x8] sm:$0xff] }
  0xb4   :  { %249 = vmatmul.bf16.gmra.mxu0 %v1251_v28 }
  0xb6   :  { %v275_v27 = vpop.f32.mrf.mxu2 }
  0xb7   :  { %v276_v32 = vadd.f32 %v1627_v26, %v275_v27 }
  0xb8   :  { %v247_v29 = vpop.f32.mrf.mxu0 }
  0xb9   :  { %v248_v30 = vadd.f32 %v1627_v26, %v247_v29  ;;  %v297_v36 = vmax.f32 %v276_v32, 0.0 }
  0xbb   :  { %v286_v33 = vmax.f32 %v248_v30, 0.0 }
  0xbd   :  { %v301_v34 = vpack.c.bf16 %v286_v33, %v285_v31 }
  0xbe   :  { %v277_v35 = vpop.f32.mrf.mxu2 }
  0xbf   :  { %v278_v37 = vadd.f32 %v1627_v26, %v277_v35  ;;  %385 = vmatmul.bf16.vlgmr.msra.gmra.mxu1 %v301_v34 }
  0xc1   :  { %v298_v38 = vmax.f32 %v278_v37, 0.0 }
  0xc3   :  { %v307_v39 = vpack.c.bf16 %v298_v38, %v297_v36 }
  0xc5   :  { %415 = vmatmul.bf16.vlgmr.msra.gmra.mxu3 %v307_v39 }
  0xc6   :  { %v280_v40 = vpop.f32.mrf.mxu2  ;;  %722 = vmatpush.bf16.msra.mxu3 %v1605_v9 }
  0xc7   :  { %v281_v41 = vadd.f32 %v1627_v26, %v280_v40 }
  0xc9   :  { %v299_v43 = vmax.f32 %v281_v41, 0.0 }
  0xca   :  { %723 = vmatpush.bf16.msra.mxu3 %v1608_v12 }
  0xce   :  { %v282_v42 = vpop.f32.mrf.mxu2 }
  0xcf   :  { %v283_v44 = vadd.f32 %v1627_v26, %v282_v42 }
  0xd1   :  { %v300_v45 = vmax.f32 %v283_v44, 0.0 }
  0xd3   :  { %v308_v46 = vpack.c.bf16 %v300_v45, %v299_v43 }
  0xd5   :  { %420 = vmatmul.bf16.gmra.mxu3 %v308_v46 }
  0xd6   :  { %v480_v48 = vpop.f32.mrf.mxu2 }
  0xd7   :  { %v481_v49 = vadd.f32 %v1640_v47, %v480_v48 }
  0xd9   :  { %499 = vrot.lane.b32.xlu0 %v481_v49, %s1532_s9 }
  0xde   :  { %v482_v50 = vpop.f32.mrf.mxu2 }
  0xdf   :  { %v483_v51 = vadd.f32 %v1640_v47, %v482_v50 }
  0xe1   :  { %501 = vrot.lane.b32.xlu0 %v483_v51, %s1532_s9 }
 0x13c   :  { %v386_v53 = vpop.f32.mrf.mxu1 }
 0x13d   :  { %v387_v54 = vadd.f32 %v1649_v52, %v386_v53 }
 0x13f   :  { %v485_v55 = vadd.f32 %v481_v49, %v387_v54 }
 0x141   :  { %v487_v56 = vsub.f32 0.0, %v485_v55 }
 0x143   :  { %v489_v57 = vmul.f32 1.442695, %v487_v56 }
 0x144   :  { %v388_v58 = vpop.f32.mrf.mxu1 }
 0x145   :  { %1307 = vpow2.f32 %v489_v57  ;;  %v389_v59 = vadd.f32 %v1649_v52, %v388_v58 }
 0x147   :  { %v486_v60 = vadd.f32 %v483_v51, %v389_v59 }
 0x148   :  { %v1672_v40 = vpop.f32.mrf.mxu3 }
 0x149   :  { %v488_v61 = vsub.f32 0.0, %v486_v60 }
 0x14b   :  { %v1308_v62 = vpop.eup %1307  ;;  %v491_v63 = vmul.f32 1.442695, %v488_v61  ;;  %v500_v1 = vpop.permute.xlu0 %499 }
 0x14c   :  { %v493_v0 = vadd.f32 1.0, %v1308_v62 }
 0x14d   :  { %1309 = vpow2.f32 %v491_v63 }
 0x14e   :  { %1311 = vrcp.f32 %v493_v0 }
 0x150   :  { %v1674_v41 = vpop.f32.mrf.mxu3 }
 0x153   :  { %v1310_v2 = vpop.eup %1309  ;;  %v502_v7 = vpop.permute.xlu0 %501 }
 0x154   :  { %v1312_v3 = vpop.eup %1311  ;;  %v494_v4 = vadd.f32 1.0, %v1310_v2 }
 0x155   :  { %v505_v5 = vmul.f32 %v1312_v3, %v500_v1 }
 0x156   :  { %1313 = vrcp.f32 %v494_v4 }
 0x157   :  { %509 = vrot.lane.b32.xlu1 %v505_v5, %s1532_s9 }
 0x158   :  { %v1676_v42 = vpop.f32.mrf.mxu3 }
 0x15c   :  { %v1314_v6 = vpop.eup %1313 }
 0x15d   :  { %v506_v8 = vmul.f32 %v1314_v6, %v502_v7 }
 0x15f   :  { %511 = vrot.lane.b32.xlu1 %v506_v8, %s1532_s9 }
 0x160   :  { %v1678_v43 = vpop.f32.mrf.mxu3 }
 0x1c9   :  { %v510_v10 = vpop.permute.xlu1 %509 }
 0x1ca   :  { %v515_v11 = vadd.f32 %v510_v10, %v387_v54 }
 0x1cc   :  { %1315 = vtanh.f32 %v515_v11 }
 0x1d1   :  { %v512_v13 = vpop.permute.xlu1 %511 }
 0x1d2   :  { %v1316_v14 = vpop.eup %1315  ;;  %v516_v15 = vadd.f32 %v512_v13, %v389_v59 }
 0x1d3   :  { %521 = vrot.lane.b32.xlu2 %v1316_v14, %s1532_s9 }
 0x1d4   :  { %1317 = vtanh.f32 %v516_v15 }
 0x1da   :  { %v1318_v16 = vpop.eup %1317 }
 0x1db   :  { %523 = vrot.lane.b32.xlu2 %v1318_v16, %s1532_s9 }
 0x22d   :  { %v522_v17 = vpop.permute.xlu2 %521 }
 0x22e   :  { %v527_v20 = vsub.f32 %v1613_v18, %v522_v17 }
 0x230   :  { %531 = vrot.lane.b32.xlu0 %v527_v20, %s1538_s4 }
 0x235   :  { %v524_v21 = vpop.permute.xlu2 %523 }
 0x236   :  { %v528_v22 = vsub.f32 %v1615_v19, %v524_v21  ;;  %v250_v19 = vpop.f32.mrf.mxu0 }
 0x237   :  { %v251_v34 = vadd.f32 %v1627_v26, %v250_v19 }
 0x238   :  { %533 = vrot.lane.b32.xlu1 %v528_v22, %s1538_s4  ;;  %v1252_v22 = vld [vmem:[#allocation4 + $0x10] sm:$0xff] }
 0x239   :  { %v287_v36 = vmax.f32 %v251_v34, 0.0  ;;  %254 = vmatmul.bf16.gmra.mxu0 %v1252_v22 }
 0x23e   :  { %v252_v33 = vpop.f32.mrf.mxu0 }
 0x23f   :  { %v253_v35 = vadd.f32 %v1627_v26, %v252_v33 }
 0x241   :  { %v288_v37 = vmax.f32 %v253_v35, 0.0 }
 0x243   :  { %v302_v38 = vpack.c.bf16 %v288_v37, %v287_v36 }
 0x245   :  { %390 = vmatmul.bf16.gmra.mxu1 %v302_v38 }
 0x2a2   :  { %v532_v23 = vpop.permute.xlu0 %531 }
 0x2a3   :  { %v537_v24 = vmul.f32 %v1312_v3, %v532_v23 }
 0x2a5   :  { %541 = vrot.lane.b32.xlu2 %v537_v24, %s1538_s4 }
 0x2aa   :  { %v534_v25 = vpop.permute.xlu1 %533 }
 0x2ab   :  { %v538_v27 = vmul.f32 %v1314_v6, %v534_v25 }
 0x2ad   :  { %543 = vrot.lane.b32.xlu0 %v538_v27, %s1538_s4 }
 0x2c2   :  { %v391_v49 = vpop.f32.mrf.mxu1 }
 0x2c3   :  { %v392_v50 = vadd.f32 %v1649_v52, %v391_v49 }
 0x2ca   :  { %v393_v57 = vpop.f32.mrf.mxu1 }
 0x2cb   :  { %v394_v58 = vadd.f32 %v1649_v52, %v393_v57 }
 0x2ff   :  { %v542_v29 = vpop.permute.xlu2 %541 }
 0x300   :  { %v547_v30 = vadd.f32 %v1316_v14, %v542_v29  ;;  %v255_v29 = vpop.f32.mrf.mxu0 }
 0x31f   :  { %v544_v18 = vpop.permute.xlu0 %543 }
 0x320   :  { %v1663_v31 = vadd.f32 %v1318_v16, %v544_v18  ;;  %v257_v18 = vpop.f32.mrf.mxu0 }
 0x322   :  { %v551_v32 = vpack.c.bf16 %v1663_v31, %v547_v30 }
 0x324   :  { %553 = vrot.lane.b32.xlu1 %v551_v32, %s1532_s9 }
 0x396   :  { %v554_v39 = vpop.permute.xlu1 %553 }
 0x397   :  { %1243 = vmatmul.msk.bf16.vlgmr.msrb.gmra.mxu3 %vm101_vm0, %v554_v39 }
 0x398   :  { %880 = vmatpush.bf16.msrb.mxu3 %v1605_v9 }
 0x39c   :  { %881 = vmatpush.bf16.msrb.mxu3 %v1608_v12 }
 0x41a   :  { %v567_v44 = vpop.f32.mrf.mxu3 }
 0x41b   :  { %v568_v45 = vadd.f32 %v1640_v47, %v567_v44 }
 0x41d   :  { %586 = vrot.lane.b32.xlu2 %v568_v45, %s1532_s9  ;;  %v572_v51 = vadd.f32 %v568_v45, %v392_v50 }
 0x41f   :  { %v574_v53 = vsub.f32 0.0, %v572_v51 }
 0x421   :  { %v576_v54 = vmul.f32 1.442695, %v574_v53 }
 0x422   :  { %v569_v46 = vpop.f32.mrf.mxu3 }
 0x423   :  { %v570_v48 = vadd.f32 %v1640_v47, %v569_v46  ;;  %1319 = vpow2.f32 %v576_v54 }
 0x425   :  { %588 = vrot.lane.b32.xlu0 %v570_v48, %s1532_s9  ;;  %v573_v61 = vadd.f32 %v570_v48, %v394_v58 }
 0x427   :  { %v575_v63 = vsub.f32 0.0, %v573_v61 }
 0x429   :  { %v1320_v55 = vpop.eup %1319  ;;  %v578_v0 = vmul.f32 1.442695, %v575_v63 }
 0x42a   :  { %v580_v56 = vadd.f32 1.0, %v1320_v55 }
 0x42c   :  { %1321 = vrcp.f32 %v580_v56 }
 0x42d   :  { %1323 = vpow2.f32 %v578_v0 }
 0x432   :  { %v1322_v59 = vpop.eup %1321 }
 0x433   :  { %v1324_v1 = vpop.eup %1323 }
 0x434   :  { %v581_v2 = vadd.f32 1.0, %v1324_v1 }
 0x436   :  { %1325 = vrcp.f32 %v581_v2 }
 0x43c   :  { %v1326_v3 = vpop.eup %1325 }
 0x477   :  { %v587_v60 = vpop.permute.xlu2 %586 }
 0x478   :  { %v592_v62 = vmul.f32 %v1322_v59, %v587_v60 }
 0x47a   :  { %596 = vrot.lane.b32.xlu1 %v592_v62, %s1532_s9 }
 0x497   :  { %v589_v4 = vpop.permute.xlu0 %588 }
 0x498   :  { %v593_v5 = vmul.f32 %v1326_v3, %v589_v4 }
 0x49a   :  { %598 = vrot.lane.b32.xlu2 %v593_v5, %s1532_s9 }
 0x4ec   :  { %v597_v6 = vpop.permute.xlu1 %596 }
 0x4ed   :  { %v602_v7 = vadd.f32 %v597_v6, %v392_v50 }
 0x4ef   :  { %1327 = vtanh.f32 %v602_v7 }
 0x4f4   :  { %v599_v8 = vpop.permute.xlu2 %598 }
 0x4f5   :  { %v1328_v10 = vpop.eup %1327  ;;  %v603_v11 = vadd.f32 %v599_v8, %v394_v58 }
 0x4f6   :  { %v606_v13 = vsub.f32 %v547_v30, %v1328_v10  ;;  %v256_v30 = vadd.f32 %v1627_v26, %v255_v29 }
 0x4f7   :  { %1329 = vtanh.f32 %v603_v11 }
 0x4f8   :  { %610 = vrot.lane.b32.xlu0 %v606_v13, %s1539_s6  ;;  %v289_v32 = vmax.f32 %v256_v30, 0.0 }
 0x4fd   :  { %v1330_v14 = vpop.eup %1329 }
 0x4fe   :  { %v607_v15 = vsub.f32 %v1663_v31, %v1330_v14  ;;  %v258_v31 = vadd.f32 %v1627_v26, %v257_v18 }
 0x500   :  { %612 = vrot.lane.b32.xlu1 %v607_v15, %s1539_s6  ;;  %v290_v19 = vmax.f32 %v258_v31, 0.0  ;;  %v1253_v15 = vld [vmem:[#allocation4 + $0x18] sm:$0xff] }
 0x501   :  { %259 = vmatmul.bf16.gmra.mxu0 %v1253_v15 }
 0x502   :  { %v303_v33 = vpack.c.bf16 %v290_v19, %v289_v32 }
 0x504   :  { %395 = vmatmul.bf16.gmra.mxu1 %v303_v33 }
 0x56a   :  { %v611_v16 = vpop.permute.xlu0 %610 }
 0x56b   :  { %v616_v17 = vmul.f32 %v1322_v59, %v611_v16 }
 0x56d   :  { %620 = vrot.lane.b32.xlu2 %v616_v17, %s1538_s4 }
 0x572   :  { %v613_v20 = vpop.permute.xlu1 %612 }
 0x573   :  { %v617_v21 = vmul.f32 %v1326_v3, %v613_v20 }
 0x575   :  { %622 = vrot.lane.b32.xlu0 %v617_v21, %s1538_s4 }
 0x581   :  { %v396_v39 = vpop.f32.mrf.mxu1 }
 0x582   :  { %v397_v44 = vadd.f32 %v1649_v52, %v396_v39 }
 0x589   :  { %v398_v51 = vpop.f32.mrf.mxu1 }
 0x58a   :  { %v399_v53 = vadd.f32 %v1649_v52, %v398_v51 }
 0x5c7   :  { %v621_v23 = vpop.permute.xlu2 %620 }
 0x5c8   :  { %v626_v25 = vadd.f32 %v1328_v10, %v621_v23  ;;  %v260_v23 = vpop.f32.mrf.mxu0 }
 0x5e7   :  { %v623_v24 = vpop.permute.xlu0 %622 }
 0x5e8   :  { %v627_v27 = vadd.f32 %v1330_v14, %v623_v24  ;;  %v262_v24 = vpop.f32.mrf.mxu0 }
 0x5ea   :  { %v630_v28 = vpack.c.bf16 %v627_v27, %v626_v25 }
 0x5ec   :  { %632 = vrot.lane.b32.xlu1 %v630_v28, %s1532_s9 }
 0x65e   :  { %v633_v34 = vpop.permute.xlu1 %632 }
 0x65f   :  { %1244 = vmatmul.msk.bf16.vlgmr.msra.gmra.mxu2 %vm101_vm0, %v633_v34 }
 0x660   :  { %959 = vmatpush.bf16.msra.mxu2 %v1605_v9 }
 0x664   :  { %960 = vmatpush.bf16.msra.mxu2 %v1608_v12 }
 0x6e2   :  { %v646_v35 = vpop.f32.mrf.mxu2 }
 0x6e3   :  { %v647_v36 = vadd.f32 %v1640_v47, %v646_v35 }
 0x6e5   :  { %665 = vrot.lane.b32.xlu2 %v647_v36, %s1532_s9  ;;  %v651_v45 = vadd.f32 %v647_v36, %v397_v44 }
 0x6e7   :  { %v653_v46 = vsub.f32 0.0, %v651_v45 }
 0x6e9   :  { %v655_v48 = vmul.f32 1.442695, %v653_v46 }
 0x6ea   :  { %v648_v37 = vpop.f32.mrf.mxu2 }
 0x6eb   :  { %v649_v38 = vadd.f32 %v1640_v47, %v648_v37  ;;  %1331 = vpow2.f32 %v655_v48 }
 0x6ed   :  { %667 = vrot.lane.b32.xlu0 %v649_v38, %s1532_s9  ;;  %v652_v56 = vadd.f32 %v649_v38, %v399_v53 }
 0x6ef   :  { %v654_v58 = vsub.f32 0.0, %v652_v56 }
 0x6f1   :  { %v1332_v49 = vpop.eup %1331  ;;  %v657_v59 = vmul.f32 1.442695, %v654_v58 }
 0x6f2   :  { %v659_v50 = vadd.f32 1.0, %v1332_v49 }
 0x6f4   :  { %1333 = vrcp.f32 %v659_v50 }
 0x6f5   :  { %1335 = vpow2.f32 %v657_v59 }
 0x6fa   :  { %v1334_v54 = vpop.eup %1333 }
 0x6fb   :  { %v1336_v60 = vpop.eup %1335 }
 0x6fc   :  { %v660_v61 = vadd.f32 1.0, %v1336_v60 }
 0x6fe   :  { %1337 = vrcp.f32 %v660_v61 }
 0x704   :  { %v1338_v62 = vpop.eup %1337 }
 0x73f   :  { %v666_v55 = vpop.permute.xlu2 %665 }
 0x740   :  { %v671_v57 = vmul.f32 %v1334_v54, %v666_v55 }
 0x742   :  { %675 = vrot.lane.b32.xlu1 %v671_v57, %s1532_s9 }
 0x75f   :  { %v668_v63 = vpop.permute.xlu0 %667 }
 0x760   :  { %v672_v0 = vmul.f32 %v1338_v62, %v668_v63 }
 0x762   :  { %677 = vrot.lane.b32.xlu2 %v672_v0, %s1532_s9 }
 0x7b4   :  { %v676_v1 = vpop.permute.xlu1 %675 }
 0x7b5   :  { %v681_v2 = vadd.f32 %v676_v1, %v397_v44 }
 0x7b7   :  { %1339 = vtanh.f32 %v681_v2 }
 0x7bc   :  { %v678_v3 = vpop.permute.xlu2 %677 }
 0x7bd   :  { %v1340_v4 = vpop.eup %1339  ;;  %v682_v5 = vadd.f32 %v678_v3, %v399_v53 }
 0x7be   :  { %v685_v6 = vsub.f32 %v626_v25, %v1340_v4  ;;  %v261_v25 = vadd.f32 %v1627_v26, %v260_v23 }
 0x7bf   :  { %1341 = vtanh.f32 %v682_v5 }
 0x7c0   :  { %689 = vrot.lane.b32.xlu0 %v685_v6, %s1539_s6  ;;  %v291_v28 = vmax.f32 %v261_v25, 0.0  ;;  %v1254_v6 = vld [vmem:[#allocation4 + $0x20] sm:$0xff] }
 0x7c1   :  { %264 = vmatmul.bf16.gmra.mxu0 %v1254_v6 }
 0x7c5   :  { %v1342_v7 = vpop.eup %1341 }
 0x7c6   :  { %v686_v8 = vsub.f32 %v627_v27, %v1342_v7  ;;  %v263_v27 = vadd.f32 %v1627_v26, %v262_v24 }
 0x7c8   :  { %691 = vrot.lane.b32.xlu1 %v686_v8, %s1539_s6  ;;  %v292_v29 = vmax.f32 %v263_v27, 0.0 }
 0x7ca   :  { %v304_v18 = vpack.c.bf16 %v292_v29, %v291_v28 }
 0x7cc   :  { %400 = vmatmul.bf16.gmra.mxu1 %v304_v18 }
 0x832   :  { %v690_v10 = vpop.permute.xlu0 %689 }
 0x833   :  { %v695_v11 = vmul.f32 %v1334_v54, %v690_v10 }
 0x835   :  { %699 = vrot.lane.b32.xlu2 %v695_v11, %s1538_s4 }
 0x83a   :  { %v692_v13 = vpop.permute.xlu1 %691 }
 0x83b   :  { %v696_v14 = vmul.f32 %v1338_v62, %v692_v13 }
 0x83d   :  { %701 = vrot.lane.b32.xlu0 %v696_v14, %s1538_s4 }
 0x83e   :  { %v265_v14 = vpop.f32.mrf.mxu0 }
 0x846   :  { %v267_v15 = vpop.f32.mrf.mxu0 }
 0x849   :  { %v401_v34 = vpop.f32.mrf.mxu1 }
 0x84a   :  { %v402_v35 = vadd.f32 %v1649_v52, %v401_v34 }
 0x88f   :  { %v700_v16 = vpop.permute.xlu2 %699 }
 0x890   :  { %v705_v20 = vadd.f32 %v1340_v4, %v700_v16  ;;  %v266_v16 = vadd.f32 %v1627_v26, %v265_v14 }
 0x8af   :  { %v702_v17 = vpop.permute.xlu0 %701 }
 0x8b0   :  { %v706_v21 = vadd.f32 %v1342_v7, %v702_v17  ;;  %v268_v17 = vadd.f32 %v1627_v26, %v267_v15 }
 0x8b2   :  { %v709_v22 = vpack.c.bf16 %v706_v21, %v705_v20 }
 0x8b4   :  { %711 = vrot.lane.b32.xlu1 %v709_v22, %s1532_s9 }
 0x926   :  { %v712_v30 = vpop.permute.xlu1 %711 }
 0x927   :  { %1245 = vmatmul.msk.bf16.vlgmr.msra.gmra.mxu3 %vm101_vm0, %v712_v30 }
 0x928   :  { %1038 = vmatpush.bf16.msra.mxu3 %v1605_v9 }
 0x92c   :  { %1039 = vmatpush.bf16.msra.mxu3 %v1608_v12  ;;  %v403_v12 = vpop.f32.mrf.mxu1 }
 0x92d   :  { %v404_v44 = vadd.f32 %v1649_v52, %v403_v12 }
 0x9aa   :  { %v725_v31 = vpop.f32.mrf.mxu3 }
 0x9ab   :  { %v726_v32 = vadd.f32 %v1640_v47, %v725_v31 }
 0x9ad   :  { %744 = vrot.lane.b32.xlu2 %v726_v32, %s1532_s9  ;;  %v730_v36 = vadd.f32 %v726_v32, %v402_v35 }
 0x9af   :  { %v732_v37 = vsub.f32 0.0, %v730_v36 }
 0x9b1   :  { %v734_v38 = vmul.f32 1.442695, %v732_v37 }
 0x9b2   :  { %v727_v19 = vpop.f32.mrf.mxu3 }
 0x9b3   :  { %v728_v33 = vadd.f32 %v1640_v47, %v727_v19  ;;  %1343 = vpow2.f32 %v734_v38 }
 0x9b5   :  { %746 = vrot.lane.b32.xlu0 %v728_v33, %s1532_s9  ;;  %v731_v48 = vadd.f32 %v728_v33, %v404_v44 }
 0x9b7   :  { %v733_v50 = vsub.f32 0.0, %v731_v48 }
 0x9b9   :  { %v1344_v9 = vpop.eup %1343  ;;  %v736_v51 = vmul.f32 1.442695, %v733_v50 }
 0x9ba   :  { %v738_v39 = vadd.f32 1.0, %v1344_v9 }
 0x9bc   :  { %1345 = vrcp.f32 %v738_v39 }
 0x9bd   :  { %1347 = vpow2.f32 %v736_v51 }
 0x9c2   :  { %v1346_v45 = vpop.eup %1345 }
 0x9c3   :  { %v1348_v53 = vpop.eup %1347 }
 0x9c4   :  { %v739_v54 = vadd.f32 1.0, %v1348_v53 }
 0x9c6   :  { %1349 = vrcp.f32 %v739_v54 }
 0x9cc   :  { %v1350_v55 = vpop.eup %1349 }
 0xa07   :  { %v745_v46 = vpop.permute.xlu2 %744 }
 0xa08   :  { %v750_v49 = vmul.f32 %v1346_v45, %v745_v46 }
 0xa0a   :  { %754 = vrot.lane.b32.xlu1 %v750_v49, %s1532_s9 }
 0xa27   :  { %v747_v56 = vpop.permute.xlu0 %746 }
 0xa28   :  { %v751_v57 = vmul.f32 %v1350_v55, %v747_v56 }
 0xa2a   :  { %756 = vrot.lane.b32.xlu2 %v751_v57, %s1532_s9 }
 0xa7c   :  { %v755_v58 = vpop.permute.xlu1 %754 }
 0xa7d   :  { %v760_v59 = vadd.f32 %v755_v58, %v402_v35 }
 0xa7f   :  { %1351 = vtanh.f32 %v760_v59 }
 0xa84   :  { %v757_v60 = vpop.permute.xlu2 %756 }
 0xa85   :  { %v1352_v61 = vpop.eup %1351  ;;  %v761_v62 = vadd.f32 %v757_v60, %v404_v44 }
 0xa86   :  { %v764_v63 = vsub.f32 %v705_v20, %v1352_v61  ;;  %v293_v20 = vmax.f32 %v266_v16, 0.0 }
 0xa87   :  { %1353 = vtanh.f32 %v761_v62 }
 0xa88   :  { %768 = vrot.lane.b32.xlu0 %v764_v63, %s1539_s6  ;;  %v1255_v63 = vld [vmem:[#allocation4 + $0x28] sm:$0xff] }
 0xa89   :  { %269 = vmatmul.bf16.gmra.mxu0 %v1255_v63 }
 0xa8d   :  { %v1354_v0 = vpop.eup %1353 }
 0xa8e   :  { %v765_v1 = vsub.f32 %v706_v21, %v1354_v0  ;;  %v294_v21 = vmax.f32 %v268_v17, 0.0 }
 0xa90   :  { %770 = vrot.lane.b32.xlu1 %v765_v1, %s1539_s6  ;;  %v305_v22 = vpack.c.bf16 %v294_v21, %v293_v20 }
 0xa92   :  { %405 = vmatmul.bf16.gmra.mxu1 %v305_v22 }
 0xafa   :  { %v769_v2 = vpop.permute.xlu0 %768 }
 0xafb   :  { %v774_v3 = vmul.f32 %v1346_v45, %v769_v2 }
 0xafd   :  { %778 = vrot.lane.b32.xlu2 %v774_v3, %s1538_s4 }
 0xb02   :  { %v771_v4 = vpop.permute.xlu1 %770 }
 0xb03   :  { %v775_v5 = vmul.f32 %v1350_v55, %v771_v4 }
 0xb05   :  { %780 = vrot.lane.b32.xlu0 %v775_v5, %s1538_s4 }
 0xb06   :  { %v270_v5 = vpop.f32.mrf.mxu0 }
 0xb0e   :  { %v272_v6 = vpop.f32.mrf.mxu0 }
 0xb0f   :  { %v406_v29 = vpop.f32.mrf.mxu1 }
 0xb10   :  { %v407_v18 = vadd.f32 %v1649_v52, %v406_v29 }
 0xb17   :  { %v408_v34 = vpop.f32.mrf.mxu1 }
 0xb18   :  { %v409_v35 = vadd.f32 %v1649_v52, %v408_v34 }
 0xb57   :  { %v779_v7 = vpop.permute.xlu2 %778 }
 0xb58   :  { %v784_v10 = vadd.f32 %v1352_v61, %v779_v7  ;;  %v271_v7 = vadd.f32 %v1627_v26, %v270_v5 }
 0xb77   :  { %v781_v8 = vpop.permute.xlu0 %780 }
 0xb78   :  { %v785_v11 = vadd.f32 %v1354_v0, %v781_v8  ;;  %v273_v8 = vadd.f32 %v1627_v26, %v272_v6 }
 0xb7a   :  { %v788_v13 = vpack.c.bf16 %v785_v11, %v784_v10 }
 0xb7c   :  { %790 = vrot.lane.b32.xlu1 %v788_v13, %s1532_s9 }
 0xbee   :  { %v791_v23 = vpop.permute.xlu1 %790 }
 0xbef   :  { %1246 = vmatmul.msk.bf16.vlgmr.msrb.gmra.mxu2 %vm101_vm0, %v791_v23 }
 0xc72   :  { %v804_v24 = vpop.f32.mrf.mxu2 }
 0xc73   :  { %v805_v25 = vadd.f32 %v1640_v47, %v804_v24 }
 0xc75   :  { %823 = vrot.lane.b32.xlu2 %v805_v25, %s1532_s9  ;;  %v809_v30 = vadd.f32 %v805_v25, %v407_v18 }
 0xc77   :  { %v811_v31 = vsub.f32 0.0, %v809_v30 }
 0xc79   :  { %v813_v32 = vmul.f32 1.442695, %v811_v31 }
 0xc7a   :  { %v806_v27 = vpop.f32.mrf.mxu2 }
 0xc7b   :  { %v807_v28 = vadd.f32 %v1640_v47, %v806_v27  ;;  %1355 = vpow2.f32 %v813_v32 }
 0xc7d   :  { %825 = vrot.lane.b32.xlu0 %v807_v28, %s1532_s9  ;;  %v810_v38 = vadd.f32 %v807_v28, %v409_v35 }
 0xc7f   :  { %v812_v39 = vsub.f32 0.0, %v810_v38 }
 0xc81   :  { %v1356_v19 = vpop.eup %1355  ;;  %v815_v12 = vmul.f32 1.442695, %v812_v39 }
 0xc82   :  { %v817_v33 = vadd.f32 1.0, %v1356_v19 }
 0xc84   :  { %1357 = vrcp.f32 %v817_v33 }
 0xc85   :  { %1359 = vpow2.f32 %v815_v12 }
 0xc8a   :  { %v1358_v36 = vpop.eup %1357 }
 0xc8b   :  { %v1360_v44 = vpop.eup %1359 }
 0xc8c   :  { %v818_v45 = vadd.f32 1.0, %v1360_v44 }
 0xc8e   :  { %1361 = vrcp.f32 %v818_v45 }
 0xc94   :  { %v1362_v46 = vpop.eup %1361 }
 0xccf   :  { %v824_v37 = vpop.permute.xlu2 %823 }
 0xcd0   :  { %v829_v9 = vmul.f32 %v1358_v36, %v824_v37 }
 0xcd2   :  { %833 = vrot.lane.b32.xlu1 %v829_v9, %s1532_s9 }
 0xcef   :  { %v826_v48 = vpop.permute.xlu0 %825 }
 0xcf0   :  { %v830_v49 = vmul.f32 %v1362_v46, %v826_v48 }
 0xcf2   :  { %835 = vrot.lane.b32.xlu2 %v830_v49, %s1532_s9 }
 0xd44   :  { %v834_v50 = vpop.permute.xlu1 %833 }
 0xd45   :  { %v839_v51 = vadd.f32 %v834_v50, %v407_v18 }
 0xd47   :  { %1363 = vtanh.f32 %v839_v51 }
 0xd4c   :  { %v836_v53 = vpop.permute.xlu2 %835 }
 0xd4d   :  { %v1364_v54 = vpop.eup %1363  ;;  %v840_v55 = vadd.f32 %v836_v53, %v409_v35 }
 0xd4e   :  { %v843_v56 = vsub.f32 %v784_v10, %v1364_v54  ;;  %v295_v10 = vmax.f32 %v271_v7, 0.0  ;;  %v419_v7 = vadd.f32 %v1649_v52, %v1674_v41 }
 0xd4f   :  { %1365 = vtanh.f32 %v840_v55 }
 0xd50   :  { %847 = vrot.lane.b32.xlu0 %v843_v56, %s1539_s6 }
 0xd55   :  { %v1366_v57 = vpop.eup %1365 }
 0xd56   :  { %v844_v58 = vsub.f32 %v785_v11, %v1366_v57  ;;  %v296_v11 = vmax.f32 %v273_v8, 0.0 }
 0xd58   :  { %849 = vrot.lane.b32.xlu1 %v844_v58, %s1539_s6  ;;  %v306_v13 = vpack.c.bf16 %v296_v11, %v295_v10 }
 0xd5a   :  { %410 = vmatmul.bf16.gmra.mxu1 %v306_v13 }
 0xdc2   :  { %v848_v59 = vpop.permute.xlu0 %847 }
 0xdc3   :  { %v853_v60 = vmul.f32 %v1358_v36, %v848_v59 }
 0xdc5   :  { %857 = vrot.lane.b32.xlu2 %v853_v60, %s1538_s4 }
 0xdca   :  { %v850_v61 = vpop.permute.xlu1 %849 }
 0xdcb   :  { %v854_v62 = vmul.f32 %v1362_v46, %v850_v61 }
 0xdcd   :  { %859 = vrot.lane.b32.xlu0 %v854_v62, %s1538_s4 }
 0xdd7   :  { %v411_v21 = vpop.f32.mrf.mxu1 }
 0xdd8   :  { %v412_v26 = vadd.f32 %v1649_v52, %v411_v21 }
 0xddf   :  { %v413_v28 = vpop.f32.mrf.mxu1 }
 0xde0   :  { %v414_v29 = vadd.f32 %v1649_v52, %v413_v28 }
 0xe1f   :  { %v858_v0 = vpop.permute.xlu2 %857 }
 0xe20   :  { %v863_v2 = vadd.f32 %v1364_v54, %v858_v0 }
 0xe3f   :  { %v860_v1 = vpop.permute.xlu0 %859 }
 0xe40   :  { %v864_v3 = vadd.f32 %v1366_v57, %v860_v1  ;;  %v417_v1 = vadd.f32 %v1649_v52, %v1672_v40 }
 0xe42   :  { %v867_v4 = vpack.c.bf16 %v864_v3, %v863_v2 }
 0xe44   :  { %869 = vrot.lane.b32.xlu1 %v867_v4, %s1532_s9 }
 0xeb6   :  { %v870_v14 = vpop.permute.xlu1 %869 }
 0xeb7   :  { %1247 = vmatmul.msk.bf16.vlgmr.msrb.gmra.mxu3 %vm101_vm0, %v870_v14 }
 0xf3a   :  { %v883_v15 = vpop.f32.mrf.mxu3 }
 0xf3b   :  { %v884_v16 = vadd.f32 %v1640_v47, %v883_v15 }
 0xf3d   :  { %902 = vrot.lane.b32.xlu2 %v884_v16, %s1532_s9  ;;  %v888_v22 = vadd.f32 %v884_v16, %v412_v26 }
 0xf3f   :  { %v890_v23 = vsub.f32 0.0, %v888_v22 }
 0xf41   :  { %v892_v24 = vmul.f32 1.442695, %v890_v23 }
 0xf42   :  { %v885_v17 = vpop.f32.mrf.mxu3 }
 0xf43   :  { %v886_v20 = vadd.f32 %v1640_v47, %v885_v17  ;;  %1367 = vpow2.f32 %v892_v24 }
 0xf45   :  { %904 = vrot.lane.b32.xlu0 %v886_v20, %s1532_s9  ;;  %v889_v31 = vadd.f32 %v886_v20, %v414_v29 }
 0xf47   :  { %v891_v19 = vsub.f32 0.0, %v889_v31 }
 0xf49   :  { %v1368_v25 = vpop.eup %1367  ;;  %v894_v33 = vmul.f32 1.442695, %v891_v19 }
 0xf4a   :  { %v896_v27 = vadd.f32 1.0, %v1368_v25 }
 0xf4c   :  { %1369 = vrcp.f32 %v896_v27 }
 0xf4d   :  { %1371 = vpow2.f32 %v894_v33 }
 0xf52   :  { %v1370_v18 = vpop.eup %1369 }
 0xf53   :  { %v1372_v34 = vpop.eup %1371 }
 0xf54   :  { %v897_v35 = vadd.f32 1.0, %v1372_v34 }
 0xf56   :  { %1373 = vrcp.f32 %v897_v35 }
 0xf5c   :  { %v1374_v36 = vpop.eup %1373 }
 0xf97   :  { %v903_v30 = vpop.permute.xlu2 %902 }
 0xf98   :  { %v908_v32 = vmul.f32 %v1370_v18, %v903_v30 }
 0xf9a   :  { %912 = vrot.lane.b32.xlu1 %v908_v32, %s1532_s9 }
 0xfb7   :  { %v905_v37 = vpop.permute.xlu0 %904 }
 0xfb8   :  { %v909_v38 = vmul.f32 %v1374_v36, %v905_v37 }
 0xfba   :  { %914 = vrot.lane.b32.xlu2 %v909_v38, %s1532_s9 }
0x100c   :  { %v913_v9 = vpop.permute.xlu1 %912 }
0x100d   :  { %v918_v39 = vadd.f32 %v913_v9, %v412_v26 }
0x100f   :  { %1375 = vtanh.f32 %v918_v39 }
0x1014   :  { %v915_v12 = vpop.permute.xlu2 %914 }
0x1015   :  { %v1376_v44 = vpop.eup %1375  ;;  %v919_v45 = vadd.f32 %v915_v12, %v414_v29  ;;  %v422_v12 = vadd.f32 %v1649_v52, %v1676_v42 }
0x1016   :  { %v922_v46 = vsub.f32 %v863_v2, %v1376_v44 }
0x1017   :  { %1377 = vtanh.f32 %v919_v45 }
0x1018   :  { %926 = vrot.lane.b32.xlu0 %v922_v46, %s1539_s6 }
0x101d   :  { %v1378_v48 = vpop.eup %1377 }
0x101e   :  { %v923_v49 = vsub.f32 %v864_v3, %v1378_v48 }
0x1020   :  { %928 = vrot.lane.b32.xlu1 %v923_v49, %s1539_s6 }
0x108a   :  { %v927_v50 = vpop.permute.xlu0 %926 }
0x108b   :  { %v932_v51 = vmul.f32 %v1370_v18, %v927_v50  ;;  %v424_v50 = vadd.f32 %v1649_v52, %v1678_v43 }
0x108d   :  { %936 = vrot.lane.b32.xlu2 %v932_v51, %s1538_s4 }
0x1092   :  { %v929_v53 = vpop.permute.xlu1 %928 }
0x1093   :  { %v933_v54 = vmul.f32 %v1374_v36, %v929_v53 }
0x1095   :  { %938 = vrot.lane.b32.xlu0 %v933_v54, %s1538_s4 }
0x10e7   :  { %v937_v55 = vpop.permute.xlu2 %936 }
0x10e8   :  { %v942_v57 = vadd.f32 %v1376_v44, %v937_v55 }
0x1107   :  { %v939_v56 = vpop.permute.xlu0 %938 }
0x1108   :  { %v943_v58 = vadd.f32 %v1378_v48, %v939_v56 }
0x110a   :  { %v946_v59 = vpack.c.bf16 %v943_v58, %v942_v57 }
0x110c   :  { %948 = vrot.lane.b32.xlu1 %v946_v59, %s1532_s9 }
0x117e   :  { %v949_v60 = vpop.permute.xlu1 %948 }
0x117f   :  { %1248 = vmatmul.msk.bf16.vlgmr.msra.gmra.mxu2 %vm101_vm0, %v949_v60 }
0x1202   :  { %v962_v61 = vpop.f32.mrf.mxu2 }
0x1203   :  { %v963_v62 = vadd.f32 %v1640_v47, %v962_v61 }
0x1205   :  { %981 = vrot.lane.b32.xlu2 %v963_v62, %s1532_s9  ;;  %v967_v2 = vadd.f32 %v963_v62, %v417_v1 }
0x1207   :  { %v969_v3 = vsub.f32 0.0, %v967_v2 }
0x1209   :  { %v971_v4 = vmul.f32 1.442695, %v969_v3 }
0x120a   :  { %v964_v63 = vpop.f32.mrf.mxu2 }
0x120b   :  { %v965_v0 = vadd.f32 %v1640_v47, %v964_v63  ;;  %1379 = vpow2.f32 %v971_v4 }
0x120d   :  { %983 = vrot.lane.b32.xlu0 %v965_v0, %s1532_s9  ;;  %v968_v11 = vadd.f32 %v965_v0, %v419_v7 }
0x120f   :  { %v970_v14 = vsub.f32 0.0, %v968_v11 }
0x1211   :  { %v1380_v5 = vpop.eup %1379  ;;  %v973_v15 = vmul.f32 1.442695, %v970_v14 }
0x1212   :  { %v975_v6 = vadd.f32 1.0, %v1380_v5 }
0x1214   :  { %1381 = vrcp.f32 %v975_v6 }
0x1215   :  { %1383 = vpow2.f32 %v973_v15 }
0x121a   :  { %v1382_v8 = vpop.eup %1381 }
0x121b   :  { %v1384_v40 = vpop.eup %1383 }
0x121c   :  { %v976_v16 = vadd.f32 1.0, %v1384_v40 }
0x121e   :  { %1385 = vrcp.f32 %v976_v16 }
0x1224   :  { %v1386_v17 = vpop.eup %1385 }
0x125f   :  { %v982_v10 = vpop.permute.xlu2 %981 }
0x1260   :  { %v987_v13 = vmul.f32 %v1382_v8, %v982_v10 }
0x1262   :  { %991 = vrot.lane.b32.xlu1 %v987_v13, %s1532_s9 }
0x127f   :  { %v984_v20 = vpop.permute.xlu0 %983 }
0x1280   :  { %v988_v21 = vmul.f32 %v1386_v17, %v984_v20 }
0x1282   :  { %993 = vrot.lane.b32.xlu2 %v988_v21, %s1532_s9 }
0x12d4   :  { %v992_v26 = vpop.permute.xlu1 %991 }
0x12d5   :  { %v997_v22 = vadd.f32 %v992_v26, %v417_v1 }
0x12d7   :  { %1387 = vtanh.f32 %v997_v22 }
0x12dc   :  { %v994_v41 = vpop.permute.xlu2 %993 }
0x12dd   :  { %v1388_v23 = vpop.eup %1387  ;;  %v998_v24 = vadd.f32 %v994_v41, %v419_v7 }
0x12de   :  { %v1001_v25 = vsub.f32 %v942_v57, %v1388_v23 }
0x12df   :  { %1389 = vtanh.f32 %v998_v24 }
0x12e0   :  { %1005 = vrot.lane.b32.xlu0 %v1001_v25, %s1539_s6 }
0x12e5   :  { %v1390_v27 = vpop.eup %1389 }
0x12e6   :  { %v1002_v28 = vsub.f32 %v943_v58, %v1390_v27 }
0x12e8   :  { %1007 = vrot.lane.b32.xlu1 %v1002_v28, %s1539_s6 }
0x1352   :  { %v1006_v29 = vpop.permute.xlu0 %1005 }
0x1353   :  { %v1011_v18 = vmul.f32 %v1382_v8, %v1006_v29 }
0x1355   :  { %1015 = vrot.lane.b32.xlu2 %v1011_v18, %s1538_s4 }
0x135a   :  { %v1008_v30 = vpop.permute.xlu1 %1007 }
0x135b   :  { %v1012_v31 = vmul.f32 %v1386_v17, %v1008_v30 }
0x135d   :  { %1017 = vrot.lane.b32.xlu0 %v1012_v31, %s1538_s4 }
0x13af   :  { %v1016_v32 = vpop.permute.xlu2 %1015 }
0x13b0   :  { %v1021_v33 = vadd.f32 %v1388_v23, %v1016_v32 }
0x13cf   :  { %v1018_v19 = vpop.permute.xlu0 %1017 }
0x13d0   :  { %v1022_v34 = vadd.f32 %v1390_v27, %v1018_v19 }
0x13d2   :  { %v1025_v35 = vpack.c.bf16 %v1022_v34, %v1021_v33 }
0x13d4   :  { %1027 = vrot.lane.b32.xlu1 %v1025_v35, %s1532_s9 }
0x1446   :  { %v1028_v36 = vpop.permute.xlu1 %1027 }
0x1447   :  { %1249 = vmatmul.msk.bf16.vlgmr.msra.gmra.mxu3 %vm101_vm0, %v1028_v36 }
0x14ca   :  { %v1041_v37 = vpop.f32.mrf.mxu3 }
0x14cb   :  { %v1042_v38 = vadd.f32 %v1640_v47, %v1041_v37 }
0x14cd   :  { %1060 = vrot.lane.b32.xlu2 %v1042_v38, %s1532_s9  ;;  %v1046_v44 = vadd.f32 %v1042_v38, %v422_v12 }
0x14cf   :  { %v1048_v45 = vsub.f32 0.0, %v1046_v44 }
0x14d1   :  { %v1050_v46 = vmul.f32 1.442695, %v1048_v45 }
0x14d2   :  { %v1043_v9 = vpop.f32.mrf.mxu3 }
0x14d3   :  { %v1044_v39 = vadd.f32 %v1640_v47, %v1043_v9  ;;  %1391 = vpow2.f32 %v1050_v46 }
0x14d5   :  { %1062 = vrot.lane.b32.xlu0 %v1044_v39, %s1532_s9  ;;  %v1047_v54 = vadd.f32 %v1044_v39, %v424_v50 }
0x14d7   :  { %v1049_v47 = vsub.f32 0.0, %v1047_v54 }
0x14d9   :  { %v1392_v48 = vpop.eup %1391  ;;  %v1052_v56 = vmul.f32 1.442695, %v1049_v47 }
0x14da   :  { %v1054_v49 = vadd.f32 1.0, %v1392_v48 }
0x14dc   :  { %1393 = vrcp.f32 %v1054_v49 }
0x14dd   :  { %1395 = vpow2.f32 %v1052_v56 }
0x14e2   :  { %v1394_v51 = vpop.eup %1393 }
0x14e3   :  { %v1396_v42 = vpop.eup %1395 }
0x14e4   :  { %v1055_v57 = vadd.f32 1.0, %v1396_v42 }
0x14e6   :  { %1397 = vrcp.f32 %v1055_v57 }
0x14ec   :  { %v1398_v58 = vpop.eup %1397 }
0x1527   :  { %v1061_v53 = vpop.permute.xlu2 %1060 }
0x1528   :  { %v1066_v55 = vmul.f32 %v1394_v51, %v1061_v53 }
0x152a   :  { %1070 = vrot.lane.b32.xlu1 %v1066_v55, %s1532_s9 }
0x1547   :  { %v1063_v59 = vpop.permute.xlu0 %1062 }
0x1548   :  { %v1067_v60 = vmul.f32 %v1398_v58, %v1063_v59 }
0x154a   :  { %1072 = vrot.lane.b32.xlu2 %v1067_v60, %s1532_s9 }
0x159c   :  { %v1071_v61 = vpop.permute.xlu1 %1070 }
0x159d   :  { %v1076_v62 = vadd.f32 %v1071_v61, %v422_v12 }
0x159f   :  { %1399 = vtanh.f32 %v1076_v62 }
0x15a4   :  { %v1073_v52 = vpop.permute.xlu2 %1072 }
0x15a5   :  { %v1400_v43 = vpop.eup %1399  ;;  %v1077_v63 = vadd.f32 %v1073_v52, %v424_v50 }
0x15a6   :  { %v1080_v0 = vsub.f32 %v1021_v33, %v1400_v43 }
0x15a7   :  { %1401 = vtanh.f32 %v1077_v63 }
0x15a8   :  { %1084 = vrot.lane.b32.xlu0 %v1080_v0, %s1539_s6 }
0x15ad   :  { %v1402_v1 = vpop.eup %1401 }
0x15ae   :  { %v1081_v2 = vsub.f32 %v1022_v34, %v1402_v1 }
0x15b0   :  { %1086 = vrot.lane.b32.xlu1 %v1081_v2, %s1539_s6 }
0x161a   :  { %v1085_v3 = vpop.permute.xlu0 %1084 }
0x161b   :  { %v1090_v4 = vmul.f32 %v1394_v51, %v1085_v3 }
0x161d   :  { %1094 = vrot.lane.b32.xlu2 %v1090_v4, %s1538_s4 }
0x1622   :  { %v1087_v5 = vpop.permute.xlu1 %1086 }
0x1623   :  { %v1091_v6 = vmul.f32 %v1398_v58, %v1087_v5 }
0x1625   :  { %1096 = vrot.lane.b32.xlu0 %v1091_v6, %s1538_s4 }
0x1677   :  { %v1095_v7 = vpop.permute.xlu2 %1094 }
0x1678   :  { %v1100_v8 = vadd.f32 %v1400_v43, %v1095_v7 }
0x167a   :  { %1104 = vrot.lane.b32.xlu1 %v1100_v8, %s1532_s9 }
0x1697   :  { %v1097_v10 = vpop.permute.xlu0 %1096 }
0x1698   :  { %v1101_v11 = vadd.f32 %v1402_v1, %v1097_v10 }
0x169a   :  { %1106 = vrot.lane.b32.xlu2 %v1101_v11, %s1532_s9 }
0x16ec   :  { %v1105_v13 = vpop.permute.xlu1 %1104 }
0x16ed   :  { %1110 = vst.msk [vmem:[#allocation3] sm:$0xff] %vm101_vm0, %v1105_v13 }
0x16ee   :  { %1115 = vst.msk [vmem:[#allocation12] sm:$0xff] %vm101_vm0, %v1105_v13 }
0x16f4   :  { %v1107_v14 = vpop.permute.xlu2 %1106 }
0x16f5   :  { %1111 = vst.msk [vmem:[#allocation3 + $0x8] sm:$0xff] %vm101_vm0, %v1107_v14 }
0x16f6   :  { %1116 = vst.msk [vmem:[#allocation12 + $0x8] sm:$0xff] %vm101_vm0, %v1107_v14 }
0x16f7   :  { %1129 = dma.vmem_to_hbm [thread:$0]  %s1122_s25, 256, %s1124_s28, [#allocation6], %s1541_s29, %s1541_s29, %s1542_s30  }
0x16f8   :  { %1529 = dma.done.wait [#allocation6], 256  }
0x16f9   :  { %1530 = vsyncadd [#allocation6], 4294967040 }
0x16fa   :  { %1134 = vsyncpa [#allocation5], 1 }
0x16fb   :  { %1135 = vsyncpa [#allocation8], 1 }
0x16fc   :  { %1136 = vsyncpa [#allocation11], 1 }
0x16fd   :  { %1137 = vsyncpa [#allocation6], 1 }

</bundles_post_ra>
